<compile_context>
chip_gen: v7x
topology: tpu7x:2x2x1
jax: 0.10.0
libtpu: 0.0.40
codegen_flags: <defaults>
</compile_context>

<pallas_src>
import numpy as np
import jax
import jax.numpy as jnp
from jax import lax
from jax.experimental import pallas as pl
from jax.experimental.pallas import tpu as pltpu


def _band_matrix(w_hwio, W):
    """Fold a (K, K, Cin, Cout) HWIO conv kernel into a (K*W*Cin, W*Cout)
    block-banded matrix B so that, for image rows flattened to length W*Cin,

        conv_out_row[y] = sum_dy  in_row[y + dy - K//2] @ B[dy]

    (out-of-range rows are zero).  Row index = dy*W*Cin + x_in*Cin + ci,
    column index = x_out*Cout + co; missing blocks encode the horizontal
    'same' zero padding.  Pure numpy: runs once, host-side.
    """
    K, _, Cin, Cout = w_hwio.shape
    p = K // 2
    B = np.zeros((K, W * Cin, W * Cout), np.float32)
    for dx in range(K):
        for xo in range(W):
            xi = xo + dx - p
            if 0 <= xi < W:
                B[:, xi * Cin:(xi + 1) * Cin,
                  xo * Cout:(xo + 1) * Cout] = w_hwio[:, dx]
    return B.reshape(K * W * Cin, W * Cout)


def prepare_params(w1_hwio, scale1, bias1, w2_hwio, scale2, bias2, W):
    """One-time host-side (numpy) preprocessing of weights + BN params."""
    w1 = np.asarray(w1_hwio, np.float32)
    w2 = np.asarray(w2_hwio, np.float32)
    K, _, Cin, Cout = w1.shape
    assert Cin == Cout, "identity shortcut requires inchannel == outchannel"
    assert K % 2 == 1, "'same' banded construction assumes odd kernel size"
    s1 = np.asarray(scale1, np.float32).reshape(1, 1, 1, Cout)
    s2 = np.asarray(scale2, np.float32).reshape(1, 1, 1, Cout)
    # Fold BN scale into the conv weights; ship the banded matrices as bf16
    # (full-rate MXU, half the weight DMA).  Bias adds stay f32.
    B1 = jnp.asarray(_band_matrix(w1 * s1, W), jnp.bfloat16)
    B2 = jnp.asarray(_band_matrix(w2 * s2, W), jnp.bfloat16)
    b1 = jnp.asarray(np.tile(np.asarray(bias1, np.float32), W).reshape(1, W * Cout))
    b2 = jnp.asarray(np.tile(np.asarray(bias2, np.float32), W).reshape(1, W * Cout))
    return dict(B1=B1, b1=b1, B2=B2, b2=b2, K=K, W=W, C=Cin)


def _make_resblock_kernel(Nb, H, WC, K):
    """Kernel closure over the static shape parameters."""
    p = K // 2
    M = Nb * H

    def kernel(x_ref, B1_ref, b1_ref, B2_ref, b2_ref, out_ref):
        # x_ref/out_ref: (Nb, H, WC) f32; B*_ref: (K*WC, WC) bf16; b*: (1, WC) f32.
        # Flatten the image batch along rows: each conv becomes ONE MXU matmul
        # with M = Nb*H rows, amortizing grid-step overhead over Nb images.
        x = x_ref[...].reshape(M, WC)                       # lane-dense f32

        # Row index within each image, used to zero the vertical 'same' halo
        # (also kills cross-image rows that the roll wraps around).
        row = lax.broadcasted_iota(jnp.int32, (Nb, H, WC), 1).reshape(M, WC)

        def conv(v, B_ref):
            # Build the K vertical taps with XLU sublane rotations (separate
            # VLIW slot from VPU/MXU) + a boundary mask — no sublane-misaligned
            # pad/concat/slice chain.
            taps = []
            for dy in range(K):
                s = p - dy                                  # out[y] reads in[y - s]
                if s == 0:
                    t = v
                else:
                    t = pltpu.roll(v, shift=s % M, axis=0)
                    if s > 0:
                        t = jnp.where(row < s, 0.0, t)
                    else:
                        t = jnp.where(row >= H + s, 0.0, t)
                taps.append(t.astype(jnp.bfloat16))
            # Stack taps along lanes: a single (M, K*WC) @ (K*WC, WC) bf16
            # matmul with f32 accumulation; the K horizontal taps + horizontal
            # zero padding live in B's block-band structure.
            cat = jnp.concatenate(taps, axis=-1)            # (M, K*WC) bf16
            return jnp.dot(cat, B_ref[...],
                           preferred_element_type=jnp.float32)   # (M, WC) f32

        h = jnp.maximum(conv(x, B1_ref) + b1_ref[...], 0.0)  # conv1 + BN1 + ReLU
        y = conv(h, B2_ref) + b2_ref[...] + x                # conv2 + BN2 + residual
        out_ref[...] = jnp.maximum(y, 0.0).reshape(Nb, H, WC)

    return kernel


def _pick_batch_tile(N, H, target_rows=256):
    """Largest divisor Nb of N with Nb*H <= target_rows, while keeping >= 2
    grid steps whenever N >= 2 so the 'parallel' axis can shard across both
    TensorCores on v7x."""
    best = 1
    for nb in range(1, N + 1):
        if N % nb:
            continue
        if nb * H > max(target_rows, H):
            continue
        if N >= 2 and N // nb < 2:
            continue
        best = nb
    return best


def residual_block(x_nhwc, params, *, batch_tile=None):
    """NHWC core.  x: (N, H, W, C) f32; params from prepare_params()."""
    N, H, W, C = x_nhwc.shape
    K = params["K"]
    assert params["W"] == W and params["C"] == C
    WC = W * C
    Nb = batch_tile if batch_tile is not None else _pick_batch_tile(N, H)
    assert N % Nb == 0

    # Merge (W, C) -> W*C: contiguous reshape, every load/store is lane-dense.
    x_flat = x_nhwc.astype(jnp.float32).reshape(N, H, WC)
    kernel = _make_resblock_kernel(Nb, H, WC, K)

    def call(single_buffer_consts):
        def const(shape):
            if single_buffer_consts:
                # Constant block index across the grid -> one VMEM buffer is
                # enough; frees VMEM for larger activation blocks.
                return pl.BlockSpec(shape, lambda n: (0,) * len(shape),
                                    pipeline_mode=pl.Buffered(1))
            return pl.BlockSpec(shape, lambda n: (0,) * len(shape))

        return pl.pallas_call(
            kernel,
            out_shape=jax.ShapeDtypeStruct((N, H, WC), jnp.float32),
            grid=(N // Nb,),
            in_specs=[
                pl.BlockSpec((Nb, H, WC), lambda n: (n, 0, 0)),   # x (+ residual)
                const((K * WC, WC)),                              # B1 (bf16)
                const((1, WC)),                                   # bias1
                const((K * WC, WC)),                              # B2 (bf16)
                const((1, WC)),                                   # bias2
            ],
            out_specs=pl.BlockSpec((Nb, H, WC), lambda n: (n, 0, 0)),
            compiler_params=pltpu.CompilerParams(
                dimension_semantics=("parallel",)),
        )(x_flat, params["B1"], params["b1"], params["B2"], params["b2"])

    try:
        out_flat = call(True)
    except Exception:
        # pl.Buffered(1) not supported on this jax version -> default 2-deep.
        out_flat = call(False)

    return out_flat.reshape(N, H, W, C)


def residual_block_nchw(x_nchw, w1_oihw, scale1, bias1, w2_oihw, scale2, bias2):
    """PyTorch-layout convenience wrapper: NCHW input, OIHW conv weights.
    (In a real model, call prepare_params once and reuse across calls.)"""
    x_nhwc = jnp.transpose(x_nchw, (0, 2, 3, 1))
    w1 = np.transpose(np.asarray(w1_oihw, np.float32), (2, 3, 1, 0))  # OIHW->HWIO
    w2 = np.transpose(np.asarray(w2_oihw, np.float32), (2, 3, 1, 0))
    params = prepare_params(w1, scale1, bias1, w2, scale2, bias2,
                            W=x_nhwc.shape[2])
    out = residual_block(x_nhwc, params)
    return jnp.transpose(out, (0, 3, 1, 2))


def _reference(x_nhwc, w1, scale1, bias1, w2, scale2, bias2):
    """Pure-JAX f32 reference (lax conv) for verification."""
    dn = ("NHWC", "HWIO", "NHWC")
    h = lax.conv_general_dilated(x_nhwc, w1, (1, 1), "SAME",
                                 dimension_numbers=dn)
    h = jnp.maximum(h * scale1 + bias1, 0.0)
    h = lax.conv_general_dilated(h, w2, (1, 1), "SAME",
                                 dimension_numbers=dn)
    return jnp.maximum(h * scale2 + bias2 + x_nhwc, 0.0)


if __name__ == "__main__":
    # Identity shortcut requires inchannel == outchannel.  W*C = 128 keeps the
    # flattened last dim exactly one lane width; N=16 lets the wrapper pick
    # Nb=8 (M = Nb*H = 128 matmul rows) with grid=(2,) parallel steps.
    N, C, H, W, K = 16, 8, 16, 16, 3
    key = jax.random.PRNGKey(0)
    kx, kw1, kw2 = jax.random.split(key, 3)

    # PyTorch-style tensors: x in NCHW, conv weights in OIHW.
    x_nchw = jax.random.normal(kx, (N, C, H, W), dtype=jnp.float32)
    w1_oihw = jax.random.normal(kw1, (C, C, K, K), dtype=jnp.float32) * 0.1
    w2_oihw = jax.random.normal(kw2, (C, C, K, K), dtype=jnp.float32) * 0.1

    # BatchNorm2d init-time params: gamma=1, beta=0, running_mean=0,
    # running_var=1, eps=1e-5  ->  folded eval-mode scale/bias.
    eps = 1e-5
    gamma = jnp.ones((C,), jnp.float32)
    beta = jnp.zeros((C,), jnp.float32)
    rmean = jnp.zeros((C,), jnp.float32)
    rvar = jnp.ones((C,), jnp.float32)
    scale = gamma / jnp.sqrt(rvar + eps)
    bias = beta - rmean * scale

    out_nchw = residual_block_nchw(x_nchw, w1_oihw, scale, bias,
                                   w2_oihw, scale, bias)
    out_nchw = jax.block_until_ready(out_nchw)

    # Verify against a pure-JAX f32 reference.
    x_nhwc = jnp.transpose(x_nchw, (0, 2, 3, 1))
    w1_hwio = jnp.transpose(w1_oihw, (2, 3, 1, 0))
    w2_hwio = jnp.transpose(w2_oihw, (2, 3, 1, 0))
    ref_nhwc = _reference(x_nhwc, w1_hwio, scale, bias, w2_hwio, scale, bias)
    ref_nchw = jnp.transpose(ref_nhwc, (0, 3, 1, 2))

    assert out_nchw.shape == (N, C, H, W)
    err = float(jnp.max(jnp.abs(out_nchw - ref_nchw)))
    # bf16 matmul operands with f32 accumulation -> loosened tolerance.
    assert err < 5e-2, f"mismatch vs reference: {err}"

    print("KERNEL_OK")
</pallas_src>

<mosaic_0001>
module attributes {stable_mosaic.version = 11 : i64} {
  func.func @kernel(%arg0: i32, %arg1: memref<8x16x128xf32, #tpu.memory_space<vmem>>, %arg2: memref<384x128xbf16, #tpu.memory_space<vmem>>, %arg3: memref<1x128xf32, #tpu.memory_space<vmem>>, %arg4: memref<384x128xbf16, #tpu.memory_space<vmem>>, %arg5: memref<1x128xf32, #tpu.memory_space<vmem>>, %arg6: memref<8x16x128xf32, #tpu.memory_space<vmem>>) attributes {dimension_semantics = [#tpu.dimension_semantics<parallel>], iteration_bounds = array<i64: 2>, scalar_prefetch = 0 : i64, scratch_operands = 0 : i64, tpu.core_type = #tpu.core_type<tc>, window_params = [{transform_indices = @transform_0, window_bounds = array<i64: 8, 16, 128>}, {pipeline_mode = #tpu.pipeline_mode<synchronous>, transform_indices = @transform_1, window_bounds = array<i64: 384, 128>}, {pipeline_mode = #tpu.pipeline_mode<synchronous>, transform_indices = @transform_2, window_bounds = array<i64: 1, 128>}, {pipeline_mode = #tpu.pipeline_mode<synchronous>, transform_indices = @transform_3, window_bounds = array<i64: 384, 128>}, {pipeline_mode = #tpu.pipeline_mode<synchronous>, transform_indices = @transform_4, window_bounds = array<i64: 1, 128>}, {transform_indices = @transform_5, window_bounds = array<i64: 8, 16, 128>}]} {
    %c0 = arith.constant 0 : index
    %c0_0 = arith.constant 0 : index
    %c0_1 = arith.constant 0 : index
    %0 = vector.load %arg1[%c0, %c0_0, %c0_1] : memref<8x16x128xf32, #tpu.memory_space<vmem>>, vector<8x16x128xf32>
    %1 = vector.shape_cast %0 : vector<8x16x128xf32> to vector<128x128xf32>
    %2 = tpu.iota {dimensions = array<i32: 1>} : vector<8x16x128xi32>
    %3 = vector.shape_cast %2 : vector<8x16x128xi32> to vector<128x128xi32>
    %c1_i32 = arith.constant 1 : i32
    %4 = tpu.dynamic_rotate %1 by %c1_i32 dim 0 : vector<128x128xf32>, i32 -> vector<128x128xf32>
    %c1_i32_2 = arith.constant 1 : i32
    %5 = vector.broadcast %c1_i32_2 : i32 to vector<128x128xi32>
    %6 = arith.cmpi slt, %3, %5 : vector<128x128xi32>
    %cst = arith.constant 0.000000e+00 : f32
    %7 = vector.broadcast %cst : f32 to vector<128x128xf32>
    %8 = arith.select %6, %7, %4 : vector<128x128xi1>, vector<128x128xf32>
    %9 = arith.truncf %8 : vector<128x128xf32> to vector<128x128xbf16>
    %10 = arith.truncf %1 : vector<128x128xf32> to vector<128x128xbf16>
    %c127_i32 = arith.constant 127 : i32
    %11 = tpu.dynamic_rotate %1 by %c127_i32 dim 0 : vector<128x128xf32>, i32 -> vector<128x128xf32>
    %c15_i32 = arith.constant 15 : i32
    %12 = vector.broadcast %c15_i32 : i32 to vector<128x128xi32>
    %13 = arith.cmpi sge, %3, %12 : vector<128x128xi32>
    %cst_3 = arith.constant 0.000000e+00 : f32
    %14 = vector.broadcast %cst_3 : f32 to vector<128x128xf32>
    %15 = arith.select %13, %14, %11 : vector<128x128xi1>, vector<128x128xf32>
    %16 = arith.truncf %15 : vector<128x128xf32> to vector<128x128xbf16>
    %17 = tpu.concatenate %9, %10, %16 in 1 : vector<128x128xbf16>, vector<128x128xbf16>, vector<128x128xbf16> -> vector<128x384xbf16>
    %c0_4 = arith.constant 0 : index
    %c0_5 = arith.constant 0 : index
    %18 = vector.load %arg2[%c0_4, %c0_5] : memref<384x128xbf16, #tpu.memory_space<vmem>>, vector<384x128xbf16>
    %cst_6 = arith.constant dense<0.000000e+00> : vector<128x128xf32>
    %19 = tpu.matmul %17, %18, %cst_6 {dimension_numbers = #tpu.dot_dimension_numbers<[1], [0], [0], [1], [0, 0, 1, 1], [], []>} : vector<128x384xbf16>, vector<384x128xbf16>, vector<128x128xf32> -> vector<128x128xf32>
    %c0_7 = arith.constant 0 : index
    %c0_8 = arith.constant 0 : index
    %20 = vector.load %arg3[%c0_7, %c0_8] : memref<1x128xf32, #tpu.memory_space<vmem>>, vector<1x128xf32>
    %21 = vector.broadcast %20 : vector<1x128xf32> to vector<128x128xf32>
    %22 = arith.addf %19, %21 : vector<128x128xf32>
    %cst_9 = arith.constant 0.000000e+00 : f32
    %23 = vector.broadcast %cst_9 : f32 to vector<128x128xf32>
    %24 = arith.maximumf %22, %23 : vector<128x128xf32>
    %c1_i32_10 = arith.constant 1 : i32
    %25 = tpu.dynamic_rotate %24 by %c1_i32_10 dim 0 : vector<128x128xf32>, i32 -> vector<128x128xf32>
    %c1_i32_11 = arith.constant 1 : i32
    %26 = vector.broadcast %c1_i32_11 : i32 to vector<128x128xi32>
    %27 = arith.cmpi slt, %3, %26 : vector<128x128xi32>
    %cst_12 = arith.constant 0.000000e+00 : f32
    %28 = vector.broadcast %cst_12 : f32 to vector<128x128xf32>
    %29 = arith.select %27, %28, %25 : vector<128x128xi1>, vector<128x128xf32>
    %30 = arith.truncf %29 : vector<128x128xf32> to vector<128x128xbf16>
    %31 = arith.truncf %24 : vector<128x128xf32> to vector<128x128xbf16>
    %c127_i32_13 = arith.constant 127 : i32
    %32 = tpu.dynamic_rotate %24 by %c127_i32_13 dim 0 : vector<128x128xf32>, i32 -> vector<128x128xf32>
    %c15_i32_14 = arith.constant 15 : i32
    %33 = vector.broadcast %c15_i32_14 : i32 to vector<128x128xi32>
    %34 = arith.cmpi sge, %3, %33 : vector<128x128xi32>
    %cst_15 = arith.constant 0.000000e+00 : f32
    %35 = vector.broadcast %cst_15 : f32 to vector<128x128xf32>
    %36 = arith.select %34, %35, %32 : vector<128x128xi1>, vector<128x128xf32>
    %37 = arith.truncf %36 : vector<128x128xf32> to vector<128x128xbf16>
    %38 = tpu.concatenate %30, %31, %37 in 1 : vector<128x128xbf16>, vector<128x128xbf16>, vector<128x128xbf16> -> vector<128x384xbf16>
    %c0_16 = arith.constant 0 : index
    %c0_17 = arith.constant 0 : index
    %39 = vector.load %arg4[%c0_16, %c0_17] : memref<384x128xbf16, #tpu.memory_space<vmem>>, vector<384x128xbf16>
    %cst_18 = arith.constant dense<0.000000e+00> : vector<128x128xf32>
    %40 = tpu.matmul %38, %39, %cst_18 {dimension_numbers = #tpu.dot_dimension_numbers<[1], [0], [0], [1], [0, 0, 1, 1], [], []>} : vector<128x384xbf16>, vector<384x128xbf16>, vector<128x128xf32> -> vector<128x128xf32>
    %c0_19 = arith.constant 0 : index
    %c0_20 = arith.constant 0 : index
    %41 = vector.load %arg5[%c0_19, %c0_20] : memref<1x128xf32, #tpu.memory_space<vmem>>, vector<1x128xf32>
    %42 = vector.broadcast %41 : vector<1x128xf32> to vector<128x128xf32>
    %43 = arith.addf %40, %42 : vector<128x128xf32>
    %44 = arith.addf %43, %1 : vector<128x128xf32>
    %cst_21 = arith.constant 0.000000e+00 : f32
    %45 = vector.broadcast %cst_21 : f32 to vector<128x128xf32>
    %46 = arith.maximumf %44, %45 : vector<128x128xf32>
    %47 = vector.shape_cast %46 : vector<128x128xf32> to vector<8x16x128xf32>
    %c0_22 = arith.constant 0 : index
    %c0_23 = arith.constant 0 : index
    %c0_24 = arith.constant 0 : index
    %48 = vector.load %arg6[%c0_22, %c0_23, %c0_24] : memref<8x16x128xf32, #tpu.memory_space<vmem>>, vector<8x16x128xf32>
    tpu.vector_store %arg6[%c0_22, %c0_23, %c0_24], %47 {strides = array<i32>} : memref<8x16x128xf32, #tpu.memory_space<vmem>>, vector<8x16x128xf32>,
    return
  }
  func.func @transform_0(%arg0: i32) -> (i32, i32, i32) {
    %c0_i32 = arith.constant 0 : i32
    %c0_i32_0 = arith.constant 0 : i32
    %c0_i32_1 = arith.constant 0 : i32
    return %arg0, %c0_i32, %c0_i32_0 : i32, i32, i32
  }
  func.func @transform_1(%arg0: i32) -> (i32, i32) {
    %c0_i32 = arith.constant 0 : i32
    %c0_i32_0 = arith.constant 0 : i32
    %c0_i32_1 = arith.constant 0 : i32
    return %c0_i32, %c0_i32_0 : i32, i32
  }
  func.func @transform_2(%arg0: i32) -> (i32, i32) {
    %c0_i32 = arith.constant 0 : i32
    %c0_i32_0 = arith.constant 0 : i32
    %c0_i32_1 = arith.constant 0 : i32
    return %c0_i32, %c0_i32_0 : i32, i32
  }
  func.func @transform_3(%arg0: i32) -> (i32, i32) {
    %c0_i32 = arith.constant 0 : i32
    %c0_i32_0 = arith.constant 0 : i32
    %c0_i32_1 = arith.constant 0 : i32
    return %c0_i32, %c0_i32_0 : i32, i32
  }
  func.func @transform_4(%arg0: i32) -> (i32, i32) {
    %c0_i32 = arith.constant 0 : i32
    %c0_i32_0 = arith.constant 0 : i32
    %c0_i32_1 = arith.constant 0 : i32
    return %c0_i32, %c0_i32_0 : i32, i32
  }
  func.func @transform_5(%arg0: i32) -> (i32, i32, i32) {
    %c0_i32 = arith.constant 0 : i32
    %c0_i32_0 = arith.constant 0 : i32
    %c0_i32_1 = arith.constant 0 : i32
    return %arg0, %c0_i32, %c0_i32_0 : i32, i32, i32
  }
}

module attributes {stable_mosaic.version = 11 : i64} {
  func.func @kernel(%arg0: i32, %arg1: memref<8x16x128xf32, #tpu.memory_space<vmem>>, %arg2: memref<384x128xbf16, #tpu.memory_space<vmem>>, %arg3: memref<1x128xf32, #tpu.memory_space<vmem>>, %arg4: memref<384x128xbf16, #tpu.memory_space<vmem>>, %arg5: memref<1x128xf32, #tpu.memory_space<vmem>>, %arg6: memref<8x16x128xf32, #tpu.memory_space<vmem>>) attributes {dimension_semantics = [#tpu.dimension_semantics<parallel>], iteration_bounds = array<i64: 2>, scalar_prefetch = 0 : i64, scratch_operands = 0 : i64, tpu.core_type = #tpu.core_type<tc>, window_params = [{transform_indices = @transform_0, window_bounds = array<i64: 8, 16, 128>}, {pipeline_mode = #tpu.pipeline_mode<synchronous>, transform_indices = @transform_1, window_bounds = array<i64: 384, 128>}, {pipeline_mode = #tpu.pipeline_mode<synchronous>, transform_indices = @transform_2, window_bounds = array<i64: 1, 128>}, {pipeline_mode = #tpu.pipeline_mode<synchronous>, transform_indices = @transform_3, window_bounds = array<i64: 384, 128>}, {pipeline_mode = #tpu.pipeline_mode<synchronous>, transform_indices = @transform_4, window_bounds = array<i64: 1, 128>}, {transform_indices = @transform_5, window_bounds = array<i64: 8, 16, 128>}]} {
    %c0 = arith.constant 0 : index
    %c0_0 = arith.constant 0 : index
    %c0_1 = arith.constant 0 : index
    %0 = vector.load %arg1[%c0, %c0_0, %c0_1] : memref<8x16x128xf32, #tpu.memory_space<vmem>>, vector<8x16x128xf32>
    %1 = vector.shape_cast %0 : vector<8x16x128xf32> to vector<128x128xf32>
    %2 = tpu.iota {dimensions = array<i32: 1>} : vector<8x16x128xi32>
    %3 = vector.shape_cast %2 : vector<8x16x128xi32> to vector<128x128xi32>
    %c1_i32 = arith.constant 1 : i32
    %4 = tpu.dynamic_rotate %1 by %c1_i32 dim 0 : vector<128x128xf32>, i32 -> vector<128x128xf32>
    %c1_i32_2 = arith.constant 1 : i32
    %5 = vector.broadcast %c1_i32_2 : i32 to vector<128x128xi32>
    %6 = arith.cmpi slt, %3, %5 : vector<128x128xi32>
    %cst = arith.constant 0.000000e+00 : f32
    %7 = vector.broadcast %cst : f32 to vector<128x128xf32>
    %8 = arith.select %6, %7, %4 : vector<128x128xi1>, vector<128x128xf32>
    %9 = arith.truncf %8 : vector<128x128xf32> to vector<128x128xbf16>
    %10 = arith.truncf %1 : vector<128x128xf32> to vector<128x128xbf16>
    %c127_i32 = arith.constant 127 : i32
    %11 = tpu.dynamic_rotate %1 by %c127_i32 dim 0 : vector<128x128xf32>, i32 -> vector<128x128xf32>
    %c15_i32 = arith.constant 15 : i32
    %12 = vector.broadcast %c15_i32 : i32 to vector<128x128xi32>
    %13 = arith.cmpi sge, %3, %12 : vector<128x128xi32>
    %cst_3 = arith.constant 0.000000e+00 : f32
    %14 = vector.broadcast %cst_3 : f32 to vector<128x128xf32>
    %15 = arith.select %13, %14, %11 : vector<128x128xi1>, vector<128x128xf32>
    %16 = arith.truncf %15 : vector<128x128xf32> to vector<128x128xbf16>
    %17 = tpu.concatenate %9, %10, %16 in 1 : vector<128x128xbf16>, vector<128x128xbf16>, vector<128x128xbf16> -> vector<128x384xbf16>
    %c0_4 = arith.constant 0 : index
    %c0_5 = arith.constant 0 : index
    %18 = vector.load %arg2[%c0_4, %c0_5] : memref<384x128xbf16, #tpu.memory_space<vmem>>, vector<384x128xbf16>
    %cst_6 = arith.constant dense<0.000000e+00> : vector<128x128xf32>
    %19 = tpu.matmul %17, %18, %cst_6 {dimension_numbers = #tpu.dot_dimension_numbers<[1], [0], [0], [1], [0, 0, 1, 1], [], []>} : vector<128x384xbf16>, vector<384x128xbf16>, vector<128x128xf32> -> vector<128x128xf32>
    %c0_7 = arith.constant 0 : index
    %c0_8 = arith.constant 0 : index
    %20 = vector.load %arg3[%c0_7, %c0_8] : memref<1x128xf32, #tpu.memory_space<vmem>>, vector<1x128xf32>
    %21 = vector.broadcast %20 : vector<1x128xf32> to vector<128x128xf32>
    %22 = arith.addf %19, %21 : vector<128x128xf32>
    %cst_9 = arith.constant 0.000000e+00 : f32
    %23 = vector.broadcast %cst_9 : f32 to vector<128x128xf32>
    %24 = arith.maximumf %22, %23 : vector<128x128xf32>
    %c1_i32_10 = arith.constant 1 : i32
    %25 = tpu.dynamic_rotate %24 by %c1_i32_10 dim 0 : vector<128x128xf32>, i32 -> vector<128x128xf32>
    %c1_i32_11 = arith.constant 1 : i32
    %26 = vector.broadcast %c1_i32_11 : i32 to vector<128x128xi32>
    %27 = arith.cmpi slt, %3, %26 : vector<128x128xi32>
    %cst_12 = arith.constant 0.000000e+00 : f32
    %28 = vector.broadcast %cst_12 : f32 to vector<128x128xf32>
    %29 = arith.select %27, %28, %25 : vector<128x128xi1>, vector<128x128xf32>
    %30 = arith.truncf %29 : vector<128x128xf32> to vector<128x128xbf16>
    %31 = arith.truncf %24 : vector<128x128xf32> to vector<128x128xbf16>
    %c127_i32_13 = arith.constant 127 : i32
    %32 = tpu.dynamic_rotate %24 by %c127_i32_13 dim 0 : vector<128x128xf32>, i32 -> vector<128x128xf32>
    %c15_i32_14 = arith.constant 15 : i32
    %33 = vector.broadcast %c15_i32_14 : i32 to vector<128x128xi32>
    %34 = arith.cmpi sge, %3, %33 : vector<128x128xi32>
    %cst_15 = arith.constant 0.000000e+00 : f32
    %35 = vector.broadcast %cst_15 : f32 to vector<128x128xf32>
    %36 = arith.select %34, %35, %32 : vector<128x128xi1>, vector<128x128xf32>
    %37 = arith.truncf %36 : vector<128x128xf32> to vector<128x128xbf16>
    %38 = tpu.concatenate %30, %31, %37 in 1 : vector<128x128xbf16>, vector<128x128xbf16>, vector<128x128xbf16> -> vector<128x384xbf16>
    %c0_16 = arith.constant 0 : index
    %c0_17 = arith.constant 0 : index
    %39 = vector.load %arg4[%c0_16, %c0_17] : memref<384x128xbf16, #tpu.memory_space<vmem>>, vector<384x128xbf16>
    %cst_18 = arith.constant dense<0.000000e+00> : vector<128x128xf32>
    %40 = tpu.matmul %38, %39, %cst_18 {dimension_numbers = #tpu.dot_dimension_numbers<[1], [0], [0], [1], [0, 0, 1, 1], [], []>} : vector<128x384xbf16>, vector<384x128xbf16>, vector<128x128xf32> -> vector<128x128xf32>
    %c0_19 = arith.constant 0 : index
    %c0_20 = arith.constant 0 : index
    %41 = vector.load %arg5[%c0_19, %c0_20] : memref<1x128xf32, #tpu.memory_space<vmem>>, vector<1x128xf32>
    %42 = vector.broadcast %41 : vector<1x128xf32> to vector<128x128xf32>
    %43 = arith.addf %40, %42 : vector<128x128xf32>
    %44 = arith.addf %43, %1 : vector<128x128xf32>
    %cst_21 = arith.constant 0.000000e+00 : f32
    %45 = vector.broadcast %cst_21 : f32 to vector<128x128xf32>
    %46 = arith.maximumf %44, %45 : vector<128x128xf32>
    %47 = vector.shape_cast %46 : vector<128x128xf32> to vector<8x16x128xf32>
    %c0_22 = arith.constant 0 : index
    %c0_23 = arith.constant 0 : index
    %c0_24 = arith.constant 0 : index
    %48 = vector.load %arg6[%c0_22, %c0_23, %c0_24] : memref<8x16x128xf32, #tpu.memory_space<vmem>>, vector<8x16x128xf32>
    tpu.vector_store %arg6[%c0_22, %c0_23, %c0_24], %47 {strides = array<i32>} : memref<8x16x128xf32, #tpu.memory_space<vmem>>, vector<8x16x128xf32>,
    return
  }
  func.func @transform_0(%arg0: i32) -> (i32, i32, i32) {
    %c0_i32 = arith.constant 0 : i32
    %c0_i32_0 = arith.constant 0 : i32
    %c0_i32_1 = arith.constant 0 : i32
    return %arg0, %c0_i32, %c0_i32_0 : i32, i32, i32
  }
  func.func @transform_1(%arg0: i32) -> (i32, i32) {
    %c0_i32 = arith.constant 0 : i32
    %c0_i32_0 = arith.constant 0 : i32
    %c0_i32_1 = arith.constant 0 : i32
    return %c0_i32, %c0_i32_0 : i32, i32
  }
  func.func @transform_2(%arg0: i32) -> (i32, i32) {
    %c0_i32 = arith.constant 0 : i32
    %c0_i32_0 = arith.constant 0 : i32
    %c0_i32_1 = arith.constant 0 : i32
    return %c0_i32, %c0_i32_0 : i32, i32
  }
  func.func @transform_3(%arg0: i32) -> (i32, i32) {
    %c0_i32 = arith.constant 0 : i32
    %c0_i32_0 = arith.constant 0 : i32
    %c0_i32_1 = arith.constant 0 : i32
    return %c0_i32, %c0_i32_0 : i32, i32
  }
  func.func @transform_4(%arg0: i32) -> (i32, i32) {
    %c0_i32 = arith.constant 0 : i32
    %c0_i32_0 = arith.constant 0 : i32
    %c0_i32_1 = arith.constant 0 : i32
    return %c0_i32, %c0_i32_0 : i32, i32
  }
  func.func @transform_5(%arg0: i32) -> (i32, i32, i32) {
    %c0_i32 = arith.constant 0 : i32
    %c0_i32_0 = arith.constant 0 : i32
    %c0_i32_1 = arith.constant 0 : i32
    return %arg0, %c0_i32, %c0_i32_0 : i32, i32, i32
  }
}

</mosaic_0001>

<bundles_post_ra>
// kernel: tpu_custom_call.1
= control target key start
LH: loop header
LB: loop body
LE: loop exit
PB: predicated region body
PF: predicated region fallthrough
CT: control target
= control target key end

     0   :  { %10 = vsyncpa [#allocation3], 0  ;;  %s3059_s0 = inlined_call_operand.hbm [shape: f32[16,16,128], index: 0, kind: input, shape index: {}]   ;;  %s3060_s1 = inlined_call_operand.hbm [shape: bf16[384,128], index: 1, kind: input, shape index: {}]   ;;  %s3061_s2 = inlined_call_operand.vmem [shape: f32[1,128], index: 2, kind: input, shape index: {}]   ;;  %s3062_s3 = inlined_call_operand.hbm [shape: bf16[384,128], index: 3, kind: input, shape index: {}]   ;;  %s3063_s4 = inlined_call_operand.vmem [shape: f32[1,128], index: 4, kind: input, shape index: {}]   ;;  %s3064_s5 = inlined_call_operand.hbm [shape: f32[16,16,128], index: 5, kind: output, shape index: {}]  }
   0x1   :  { %12 = vsyncpa [#allocation3 + $0x1], 0 }
   0x2   :  { %13 = vsyncpa [#allocation6], 0 }
   0x3   :  { %14 = vsyncpa [#allocation4], 0 }
   0x4   :  { %16 = vsyncpa [#allocation4 + $0x1], 0  ;;  %s2253_s18 = smov 0   ;;  %s2255_s19 = smov 0  }
   0x5   :  { %s2257_s20 = smov 0   ;;  %s2259_s21 = smov 0  }
   0x6 LB: > { %s2274_s22 = sadd.s32 4294967295, %s2210_s21   ;;  %s1497_s23 = sadd.s32 4294967294, %s2210_s21   ;;  %s2210_s21 = sphi %s2259_s21, %s3092_s21   ;;  %s2206_s20 = sphi %s2257_s20, %s3091_s20   ;;  %s2202_s19 = sphi %s2255_s19, %s3090_s19   ;;  %s2198_s18 = sphi %s2253_s18, %s3089_s18  }
   0x7   : > { %p42_p0 = scmp.ne.s32.totalorder %s2202_s19, %s2198_s18  ;;  %p3065_p1 = scmp.eq.s32.totalorder %s2274_s22, 0 }
   0x8   : > { %p156_p3 = scmp.eq.s32.totalorder %s1497_s23, 1  ;;  %p1498_p5 = scmp.ge.s32.totalorder %s2210_s21, 1 }
   0x9   : > { %p2283_p4 = por %p3065_p1, %p42_p0  ;;  %p163_p7 = scmp.lt.s32.totalorder %s2210_s21, 3 }
   0xa   : > { %p2288_p6 = por %p156_p3, %p42_p0  ;;  %s2212_s27 = smov [#allocation5]  }
   0xb   : > { %s3068_s24 = scalar_select %p2283_p4, 1, 0 }
   0xc   : > { %s3069_s25 = scalar_select %p2288_p6, 1, 0 }
   0xd   : > { %p2293_p8 = pnand %p1498_p5, %p163_p7  ;;  %s175_s28 = sshll.u32 %s2212_s27, 4  ;;  %s2297_s28 = int_to_ptr.vmem [resolvable:$true] %s175_s28 }
   0xe   : > { %s2213_s30 = smov [#allocation7]   ;;  %s2054_s9 = scalar_lea.hbm %s3060_s1, 3072 }
   0xf   : > { %p1936_p9 = pneg %p2293_p8  ;;  %s191_s6 = sshll.u32 %s2213_s30, 4  ;;  %s2308_s6 = int_to_ptr.vmem [resolvable:$true] %s191_s6 }
  0x10   : > { %p2055_p12 = scmp.ne.s32.totalorder %s3060_s1, %s2054_s9  ;;  %p2061_p5 = scmp.lt.u32.totalorder %s2054_s9, %s3060_s1 }
  0x11   : > { %p2304_p11 = pnand %p1936_p9, %p3065_p1 }
  0x13   : > { %p2056_p13 = pneg %p2304_p11 }
  0x15   : > { %p2057_p0 = pnand %p2056_p13, %p2055_p12 }
  0x17   : > { %p2058_p3 = pneg %p2057_p0 }
  0x19   : > { %p2063_p7 = pnand %p2061_p5, %p2058_p3 }
  0x1b   : > { %2066 = shalt.err (!%p2063_p7)
}
  0x1c   : > { %s2067_s14 = scalar_lea.vmem %s2297_s28, 3072  ;;  %p2075_p2 = scmp.lt.s32.totalorder %s2297_s28, %s2297_s28 }
  0x1d   : > { %p2068_p9 = scmp.ne.s32.totalorder %s2297_s28, %s2067_s14  ;;  %p2076_p12 = scmp.lt.s32.totalorder %s2067_s14, %s2067_s14 }
  0x1f   : > { %p2070_p10 = pnand %p2068_p9, %p2056_p13  ;;  %p2077_p0 = por %p2076_p12, %p2075_p2 }
  0x21   : > { %p2071_p1 = pneg %p2070_p10 }
  0x23   : > { %p2078_p6 = pnand %p2077_p0, %p2071_p1 }
  0x25   : > { %2081 = shalt.err (!%p2078_p6)
}
  0x26   : > { %s2214_s15 = smov 64   ;;  %s2215_s16 = smov 4  }
  0x27   : > { %1939 = dma.hbm_to_vmem [thread:$0]  (!%p2304_p11), %s3060_s1, 3072, %s2297_s28, [#allocation6], %s2214_s15, %s2214_s15, %s2215_s16  }
  0x28   : > { %s2082_s7 = scalar_lea.hbm %s3062_s3, 3072 }
  0x29   : > { %p2083_p2 = scmp.ne.s32.totalorder %s3062_s3, %s2082_s7  ;;  %p2089_p10 = scmp.lt.u32.totalorder %s2082_s7, %s3062_s3 }
  0x2b   : > { %p2085_p1 = pnand %p2083_p2, %p2056_p13 }
  0x2d   : > { %p2086_p6 = pneg %p2085_p1 }
  0x2f   : > { %p2091_p3 = pnand %p2089_p10, %p2086_p6 }
  0x31   : > { %2094 = shalt.err (!%p2091_p3)
}
  0x32   : > { %s2095_s28 = scalar_lea.vmem %s2308_s6, 3072  ;;  %p2103_p12 = scmp.lt.s32.totalorder %s2308_s6, %s2308_s6 }
  0x33   : > { %p2096_p5 = scmp.ne.s32.totalorder %s2308_s6, %s2095_s28  ;;  %p2104_p0 = scmp.lt.s32.totalorder %s2095_s28, %s2095_s28 }
  0x35   : > { %p2098_p7 = pnand %p2096_p5, %p2056_p13  ;;  %p2105_p2 = por %p2104_p0, %p2103_p12 }
  0x37   : > { %p2099_p9 = pneg %p2098_p7 }
  0x39   : > { %p2106_p1 = pnand %p2105_p2, %p2099_p9 }
  0x3b   : > { %2109 = shalt.err (!%p2106_p1)
}
  0x3c   : > { %1942 = dma.hbm_to_vmem [thread:$0]  (!%p2304_p11), %s3062_s3, 3072, %s2308_s6, [#allocation6], %s2214_s15, %s2214_s15, %s2215_s16  }
  0x3d   : > { %s2363_s14 = sadd.s32 1, %s2210_s21   ;;  %s29_s29 = sadd.s32 1, %s2206_s20 }
  0x3e   : > { %s26_s17 = ssub.s32 %s2210_s21, %s2363_s14  ;;  %p36_p13 = scmp.ne.s32.totalorder %s2206_s20, %s2202_s19 }
  0x3f   : > { %p27_p6 = scmp.eq.s32.totalorder %s26_s17, 0  ;;  %p37_p10 = scmp.eq.s32.totalorder %s2210_s21, 0 }
  0x40   : > { %p3072_p3 = scmp.eq.s32.totalorder %s2274_s22, 1  ;;  %p1953_p7 = scmp.lt.s32.totalorder %s2210_s21, 2 }
  0x41   : > { %s2379_s27 = scalar_select %p27_p6, %s2206_s20, %s29_s29  }
  0x42   : > { %p2373_p5 = por %p3072_p3, %p36_p13  ;;  %p38_p9 = por %p37_p10, %p36_p13 }
  0x43   : > { %s208_s30 = sand.u32 1, %s2206_s20   ;;  %s1696_s6 = sshll.u32 %s2210_s21, 11 }
  0x44   : > { %s3073_s23 = scalar_select %p2373_p5, 1, 0 }
  0x45   : > { %s1502_s7 = sshll.u32 %s208_s30, 7  ;;  %s2386_s8 = scalar_lea.hbm %s3059_s0, %s1696_s6 }
  0x46   : > { %s212_s9 = scalar_lea.vmem [#allocation2], %s1502_s7  ;;  %p2390_p11 = pnand %p1953_p7, %p38_p9 }
  0x47   : > { %s220_s10 = sshll.u32 %s212_s9, 4  ;;  %s2394_s28 = scalar_lea.sflag [#allocation3], %s208_s30  ;;  %s2388_s10 = int_to_ptr.vmem [resolvable:$true] %s220_s10 }
  0x48   : > { %s2110_s12 = scalar_lea.hbm %s2386_s8, 2048  ;;  %p2112_p0 = pneg %p2390_p11 }
  0x49   : > { %p2111_p12 = scmp.ne.s32.totalorder %s2386_s8, %s2110_s12  ;;  %s2115_s17 = scalar_lea.hbm %s3059_s0, 4096 }
  0x4a   : > { %p2116_p13 = scmp.lt.u32.totalorder %s2386_s8, %s3059_s0  ;;  %p2117_p6 = scmp.lt.u32.totalorder %s2115_s17, %s2110_s12 }
  0x4b   : > { %p2113_p2 = pnand %p2112_p0, %p2111_p12  ;;  %p2119_p3 = scmp.lt.u32.totalorder %s2110_s12, %s2386_s8 }
  0x4c   : > { %p2118_p10 = por %p2117_p6, %p2116_p13 }
  0x4d   : > { %p2114_p1 = pneg %p2113_p2 }
  0x4e   : > { %p2120_p7 = por %p2119_p3, %p2118_p10 }
  0x50   : > { %p2121_p9 = pnand %p2120_p7, %p2114_p1 }
  0x52   : > { %2124 = shalt.err (!%p2121_p9)
}
  0x53   : > { %s2125_s30 = scalar_lea.vmem %s2388_s10, 2048  ;;  %s2216_s15 = smov [#allocation2]  }
  0x54   : > { %p2126_p12 = scmp.ne.s32.totalorder %s2388_s10, %s2125_s30  ;;  %s2130_s16 = sshll.u32 %s2216_s15, 4  ;;  %s2131_s16 = int_to_ptr.vmem [resolvable:$false] %s2130_s16 }
  0x55   : > { %s2132_s9 = scalar_lea.vmem %s2131_s16, 4096  ;;  %p2133_p4 = scmp.lt.s32.totalorder %s2388_s10, %s2131_s16 }
  0x56   : > { %p2128_p2 = pnand %p2126_p12, %p2112_p0  ;;  %p2134_p13 = scmp.lt.s32.totalorder %s2132_s9, %s2125_s30 }
  0x58   : > { %p2129_p5 = pneg %p2128_p2  ;;  %p2135_p6 = por %p2134_p13, %p2133_p4 }
  0x5a   : > { %p2136_p10 = pnand %p2135_p6, %p2129_p5 }
  0x5c   : > { %2139 = shalt.err (!%p2136_p10)
}
  0x5d   : > { %s2217_s12 = smov 128   ;;  %s2218_s13 = smov 8  }
  0x5e   : > { %1946 = dma.hbm_to_vmem [thread:$0]  (!%p2390_p11), %s2386_s8, 2048, %s2388_s10, %s2394_s28, %s2217_s12, %s2217_s12, %s2218_s13  }
  0x5f   : > { %232 = sbr.rel (%p2293_p8) target bundleno = 719 (0x2cf), region = 40  ;;  %s2425_s29 = sand.u32 (!%p2293_p8), 1, %s2202_s19  }
  0x60   : > { %s1507_s17 = sshll.u32 (!%p2293_p8), %s2425_s29, 7  ;;  %s235_s7 = scalar_lea.sflag (!%p2293_p8), [#allocation3], %s2425_s29 }
  0x61   : > { %s2431_s6 = scalar_lea.vmem (!%p2293_p8), [#allocation2], %s1507_s17  ;;  %p3075_p4 = scmp.ne.s32.totalorder (!%p2293_p8), %s3068_s24, 0 }
  0x66   : > { %2185 = dma.done.wait (%p3075_p4), %s235_s7, 2048  }
  0x67   : > { %2187 = vsyncadd (%p3075_p4), %s235_s7, 4294965248  ;;  %p3076_p5 = scmp.eq.s32.totalorder %s2274_s22, 0 }
  0x69   : > { %2189 = dma.done.wait (%p3076_p5), [#allocation6], 6144   ;;  %p3077_p8 = pmov %p3076_p5 }
  0x6a   : > { %v1998_v0 = vld [vmem:[#allocation5 + $0x40] sm:$0xff]   ;;  %v2000_v2 = vld [vmem:[#allocation5 + $0x48] sm:$0xff]   ;;  %v2003_v5 = vld [vmem:[#allocation5 + $0x50] sm:$0xff]   ;;  %v292_v13 = vlaneseq  ;;  %vm2219_vm4 = vmmov 1   ;;  %s2952_s11 = scalar_lea.vmem [#allocation8], %s1507_s17  ;;  %s1698_s28 = sshll.u32 %s2274_s22, 11 }
  0x6b   : > { %2191 = vsyncadd (%p3077_p8), [#allocation6], 4294961152  ;;  %v1999_v1 = vld [vmem:[#allocation5] sm:$0xff]   ;;  %1700 = vmatprep.subr.bf16.mxu0 %v1998_v0  ;;  %v2002_v4 = vld [vmem:[#allocation5 + $0x8] sm:$0xff]   ;;  %s1405_s30 = sshll.u32 %s2952_s11, 4  ;;  %s3011_s9 = scalar_lea.hbm %s3064_s5, %s1698_s28  ;;  %s3013_s30 = int_to_ptr.vmem [resolvable:$true] %s1405_s30 }
  0x6c   : > { %1701 = vmatpush3.bf16.msra.mxu0 %v1999_v1  ;;  %v2001_v3 = vld [vmem:[#allocation5 + $0x80] sm:$0xff]   ;;  %v2004_v6 = vld [vmem:[#allocation5 + $0x88] sm:$0xff]   ;;  %v2005_v7 = vld [vmem:[#allocation5 + $0x10] sm:$0xff]   ;;  %v2441_v17 = vshrl.u32 %v292_v13, 7  ;;  %s1391_s12 = scalar_lea.sflag [#allocation4], %s2425_s29  ;;  %s2140_s13 = scalar_lea.vmem %s3013_s30, 2048 }
  0x6d   : > { %1702 = vmatprep.subr.bf16.mxu0 %v2000_v2  ;;  %1860 = vmatprep.subr.bf16.mxu1 %v2001_v3  ;;  %v2006_v8 = vld [vmem:[#allocation5 + $0x58] sm:$0xff]   ;;  %v2007_v9 = vld [vmem:[#allocation5 + $0x90] sm:$0xff]   ;;  %v2009_v11 = vld [vmem:[#allocation5 + $0x60] sm:$0xff]   ;;  %p2141_p11 = scmp.ne.s32.totalorder %s3013_s30, %s2140_s13  ;;  %p3086_p0 = scmp.ne.s32.totalorder %s3073_s23, 0 }
  0x6e   : > { %1861 = vmatpush3.bf16.msra.mxu1 %v2001_v3  ;;  %v2008_v10 = vld [vmem:[#allocation5 + $0x18] sm:$0xff]   ;;  %v2011_v14 = vld [vmem:[#allocation5 + $0x20] sm:$0xff]   ;;  %v2012_v16 = vld [vmem:[#allocation5 + $0x68] sm:$0xff]   ;;  %v294_v20 = vadd.s32 8, %v2441_v17  ;;  %vm311_vm0 = vcmp.lt.s32.totalorder %v2441_v17, 1  ;;  %vm377_vm1 = vcmp.lt.s32.totalorder %v2441_v17, 7 }
  0x6f   : > { %1862 = vmatprep.subr.bf16.mxu1 %v2004_v6  ;;  %v2010_v12 = vld [vmem:[#allocation5 + $0x98] sm:$0xff]   ;;  %v2013_v15 = vld [vmem:[#allocation5 + $0xa0] sm:$0xff]   ;;  %v2014_v18 = vld [vmem:[#allocation5 + $0x28] sm:$0xff]   ;;  %p2142_p1 = pnand %p2141_p11, %p3086_p0  ;;  %s2220_s22 = smov [#allocation8]  }
  0x70   : > { %1703 = vmatpush3.bf16.msra.mxu0 %v2002_v4  ;;  %v2016_v19 = vld [vmem:[#allocation5 + $0xa8] sm:$0xff]   ;;  %v2015_v21 = vld [vmem:[#allocation5 + $0x70] sm:$0xff]   ;;  %v2445_v24 = vld [vmem:[%s2431_s6] sm:$0xff]  ;;  %vm1699_vm2 = vcmp.lt.s32.totalorder %v294_v20, 15  ;;  %s2144_s17 = sshll.u32 %s2220_s22, 4  ;;  %s2145_s17 = int_to_ptr.vmem [resolvable:$false] %s2144_s17 }
  0x71   : > { %1704 = vmatprep.subr.bf16.mxu0 %v2003_v5  ;;  %v2017_v22 = vld [vmem:[#allocation5 + $0x30] sm:$0xff]   ;;  %v2448_v25 = vld [vmem:[%s2431_s6 + $0x8] sm:$0xff]  ;;  %v2451_v26 = vld [vmem:[%s2431_s6 + $0x78] sm:$0xff]  ;;  %v295_v28 = vrot.slane %v2445_v24, 7  ;;  %v361_v33 = vrot.slane %v2445_v24, 1  ;;  %p2143_p3 = pneg %p2142_p1  ;;  %s2146_s7 = scalar_lea.vmem %s2145_s17, 4096 }
  0x72   : > { %1863 = vmatpush3.bf16.msra.mxu1 %v2004_v6  ;;  %v2019_v23 = vld [vmem:[#allocation5 + $0xb0] sm:$0xff]   ;;  %v2018_v27 = vld [vmem:[#allocation5 + $0x78] sm:$0xff]   ;;  %v296_v29 = vrot.slane %v2448_v25, 7  ;;  %v353_v30 = vpack.c.bf16 %v2448_v25, %v2445_v24  ;;  %v310_v31 = vrot.slane %v2451_v26, 7  ;;  %v362_v34 = vrot.slane %v2448_v25, 1  ;;  %v2470_v37 = vld [vmem:[%s2431_s6 + $0x20] sm:$0xff]  ;;  %p2147_p7 = scmp.lt.s32.totalorder %s3013_s30, %s2145_s17  ;;  %p2148_p9 = scmp.lt.s32.totalorder %s2146_s7, %s2140_s13 }
  0x73   : > { %1864 = vmatprep.subr.bf16.mxu1 %v2007_v9  ;;  %v2461_v32 = vld [vmem:[%s2431_s6 + $0x10] sm:$0xff]  ;;  %v2466_v35 = vld [vmem:[%s2431_s6 + $0x18] sm:$0xff]  ;;  %vm2481_vm3 = vmneg %vm311_vm0  ;;  %v365_v45 = vrot.slane %v2470_v37, 1 }
  0x74   : > { %1705 = vmatpush3.bf16.msra.mxu0 %v2005_v7  ;;  %651 = vmatprep.mubr.bf16.mxu0 %v353_v30  ;;  %v363_v36 = vrot.slane %v2461_v32, 1  ;;  %v364_v38 = vrot.slane %v2466_v35, 1  ;;  %v2020_v39 = vld [vmem:[#allocation5 + $0x38] sm:$0xff]   ;;  %v326_v40 = vsel %vm311_vm0, %v295_v28, %v296_v29  ;;  %v327_v41 = vsel %vm311_vm0, %v310_v31, %v295_v28  ;;  %vm2493_vm5 = vmpackc.low %vm1699_vm2, %vm2219_vm4  ;;  %v2498_v48 = vld [vmem:[%s2431_s6 + $0x30] sm:$0xff]  ;;  %p2149_p12 = por %p2148_p9, %p2147_p7 }
  0x75   : > { %1706 = vmatprep.subr.bf16.mxu0 %v2006_v8  ;;  %v2021_v43 = vld [vmem:[#allocation5 + $0xb8] sm:$0xff]   ;;  %v392_v44 = vsel %vm377_vm1, %v361_v33, %v362_v34  ;;  %v2501_v50 = vld [vmem:[%s2431_s6 + $0x28] sm:$0xff]  ;;  %v1538_v52 = vpack.c.bf16 %v326_v40, %v327_v41  ;;  %v2022_v56 = vld [vmem:[#allocation7 + $0x80] sm:$0xff]   ;;  %v354_v58 = vpack.c.bf16 %v2466_v35, %v2461_v32  ;;  %v297_v59 = vrot.slane %v2461_v32, 7 }
  0x76   : > { %1865 = vmatpush3.bf16.msra.mxu1 %v2007_v9  ;;  %v391_v46 = vsel %vm377_vm1, %v362_v34, %v363_v36  ;;  %v2504_v51 = vld [vmem:[%s2431_s6 + $0x38] sm:$0xff]  ;;  %v389_v53 = vsel %vm377_vm1, %v364_v38, %v365_v45  ;;  %v390_v54 = vsel %vm377_vm1, %v363_v36, %v364_v38  ;;  %v366_v55 = vrot.slane %v2501_v50, 1  ;;  %vm2513_vm6 = vmpackc.low %vm2219_vm4, %vm2481_vm3  ;;  %v2523_v62 = vld [vmem:[%s2431_s6 + $0x40] sm:$0xff]  ;;  %p2150_p2 = pnand %p2149_p12, %p2143_p3 }
  0x77   : > { %1866 = vmatprep.subr.bf16.mxu1 %v2010_v12  ;;  %v1570_v49 = vpack.c.bf16 %v391_v46, %v392_v44  ;;  %v298_v60 = vrot.slane %v2466_v35, 7  ;;  %v367_v61 = vrot.slane %v2498_v48, 1  ;;  %v2530_v0 = vld [vmem:[%s2431_s6 + $0x50] sm:$0xff]  ;;  %v1574_v1 = vpack.c.bf16 %v389_v53, %v390_v54  ;;  %v2543_v8 = vld [vmem:[%s2431_s6 + $0x48] sm:$0xff]  ;;  %v2552_v13 = vld [vmem:[%s2431_s6 + $0x60] sm:$0xff] }
  0x78   : > { %1707 = vmatpush3.bf16.msra.mxu0 %v2008_v10  ;;  %v388_v63 = vsel %vm377_vm1, %v365_v45, %v366_v55  ;;  %v368_v4 = vrot.slane %v2504_v51, 1  ;;  %v369_v5 = vrot.slane %v2523_v62, 1  ;;  %v325_v7 = vsel %vm311_vm0, %v296_v29, %v297_v59  ;;  %v2575_v29 = vld [vmem:[%s2431_s6 + $0x68] sm:$0xff] }
  0x79   : > { %1708 = vmatprep.subr.bf16.mxu0 %v2009_v11  ;;  %1876 = vmatprep.mubr.msk.bf16.mxu1 %vm2493_vm5, %v1570_v49  ;;  %v387_v2 = vsel %vm377_vm1, %v366_v55, %v367_v61  ;;  %v324_v6 = vsel %vm311_vm0, %v297_v59, %v298_v60  ;;  %v300_v9 = vrot.slane %v2501_v50, 7  ;;  %v370_v10 = vrot.slane %v2543_v8, 1 }
  0x7a   : > { %1867 = vmatpush3.bf16.msra.mxu1 %v2010_v12  ;;  %v1578_v3 = vpack.c.bf16 %v387_v2, %v388_v63  ;;  %v371_v11 = vrot.slane %v2530_v0, 1  ;;  %v2549_v12 = vld [vmem:[%s2431_s6 + $0x58] sm:$0xff]  ;;  %v355_v20 = vpack.c.bf16 %v2501_v50, %v2470_v37  ;;  %v373_v28 = vrot.slane %v2552_v13, 1 }
  0x7b   : > { %1868 = vmatprep.subr.bf16.mxu1 %v2013_v15  ;;  %v374_v34 = vrot.slane %v2575_v29, 1  ;;  %v302_v40 = vrot.slane %v2504_v51, 7  ;;  %v356_v44 = vpack.c.bf16 %v2504_v51, %v2498_v48  ;;  %v376_v53 = vrot.slane %v2451_v26, 1 }
  0x7c   : > { %1709 = vmatpush3.bf16.msra.mxu0 %v2011_v14  ;;  %v299_v14 = vrot.slane %v2470_v37, 7  ;;  %v357_v59 = vpack.c.bf16 %v2543_v8, %v2523_v62  ;;  %v358_v2 = vpack.c.bf16 %v2549_v12, %v2530_v0 }
  0x7d   : > { %1710 = vmatprep.subr.bf16.mxu0 %v2012_v16  ;;  %v1542_v16 = vpack.c.bf16 %v324_v6, %v325_v7  ;;  %v380_v46 = vsel %vm377_vm1, %v373_v28, %v374_v34  ;;  %v308_v7 = vrot.slane %v2575_v29, 7 }
  0x7e   : > { %1869 = vmatpush3.bf16.msra.mxu1 %v2013_v15  ;;  %v2558_v15 = vld [vmem:[%s2431_s6 + $0x70] sm:$0xff]  ;;  %v322_v37 = vsel %vm311_vm0, %v299_v14, %v300_v9  ;;  %v323_v38 = vsel %vm311_vm0, %v298_v60, %v299_v14  ;;  %v303_v60 = vrot.slane %v2523_v62, 7  ;;  %v305_v62 = vrot.slane %v2530_v0, 7 }
  0x7f   : > { %1870 = vmatprep.subr.bf16.mxu1 %v2016_v19  ;;  %v375_v36 = vrot.slane %v2558_v15, 1  ;;  %v1546_v41 = vpack.c.bf16 %v322_v37, %v323_v38  ;;  %v307_v0 = vrot.slane %v2552_v13, 7  ;;  %v2034_v37 = vld [vmem:[#allocation7 + $0x50] sm:$0xff]  }
  0x80   : > { %1711 = vmatpush3.bf16.msra.mxu0 %v2014_v18  ;;  %v385_v18 = vsel %vm377_vm1, %v368_v4, %v369_v5  ;;  %v2035_v38 = vld [vmem:[#allocation7 + $0x10] sm:$0xff]  }
  0x81   : > { %1712 = vmatprep.subr.bf16.mxu0 %v2015_v21  ;;  %v383_v21 = vsel %vm377_vm1, %v370_v10, %v371_v11  ;;  %v379_v45 = vsel %vm377_vm1, %v374_v34, %v375_v36  ;;  %v378_v55 = vsel %vm377_vm1, %v375_v36, %v376_v53  ;;  %v2032_v34 = vld [vmem:[#allocation7 + $0x48] sm:$0xff]  }
  0x82   : > { %1871 = vmatpush3.bf16.msra.mxu1 %v2016_v19  ;;  %v386_v19 = vsel %vm377_vm1, %v367_v61, %v368_v4  ;;  %v2033_v36 = vld [vmem:[#allocation7 + $0x8] sm:$0xff]  }
  0x83   : > { %1872 = vmatprep.subr.bf16.mxu1 %v2019_v23 }
  0x84   : > { %1713 = vmatpush3.bf16.msra.mxu0 %v2017_v22  ;;  %v384_v22 = vsel %vm377_vm1, %v369_v5, %v370_v10  ;;  %v314_v10 = vsel %vm311_vm0, %v307_v0, %v308_v7 }
  0x85   : > { %1714 = vmatprep.subr.bf16.mxu0 %v2018_v27  ;;  %v372_v27 = vrot.slane %v2549_v12, 1  ;;  %v1586_v30 = vpack.c.bf16 %v383_v21, %v384_v22  ;;  %v2023_v21 = vld [vmem:[#allocation7 + $0x88] sm:$0xff]   ;;  %v2025_v22 = vld [vmem:[#allocation7 + $0x98] sm:$0xff]  }
  0x86   : > { %1873 = vmatpush3.bf16.msra.mxu1 %v2019_v23  ;;  %v1582_v23 = vpack.c.bf16 %v385_v18, %v386_v19  ;;  %v309_v18 = vrot.slane %v2558_v15, 7 }
  0x87   : > { %1874 = vmatprep.subr.bf16.mxu1 %v2021_v43  ;;  %v381_v42 = vsel %vm377_vm1, %v372_v27, %v373_v28  ;;  %v2030_v28 = vld [vmem:[#allocation7 + $0x40] sm:$0xff]  }
  0x88   : > { %1715 = vmatpush3.bf16.msra.mxu0 %v2020_v39  ;;  %v301_v39 = vrot.slane %v2498_v48, 7  ;;  %v313_v19 = vsel %vm311_vm0, %v308_v7, %v309_v18 }
  0x89   : > { %1892 = vmatprep.subr.bf16.mxu0 %v2022_v56 }
  0x8a   : > { %1875 = vmatpush3.bf16.msra.mxu1 %v2021_v43  ;;  %v382_v43 = vsel %vm377_vm1, %v371_v11, %v372_v27  ;;  %v320_v54 = vsel %vm311_vm0, %v301_v39, %v302_v40  ;;  %v321_v48 = vsel %vm311_vm0, %v300_v9, %v301_v39  ;;  %v359_v9 = vpack.c.bf16 %v2575_v29, %v2552_v13  ;;  %v2029_v27 = vld [vmem:[#allocation7 + $0xb8] sm:$0xff]  }
  0x8b   : > { %1539 = vmatmul.mubr.msk.bf16.vlgmr.msra.gmra.mrb[0].mxu0 %vm2513_vm6, %v1538_v52  ;;  %v1590_v49 = vpack.c.bf16 %v381_v42, %v382_v43  ;;  %v1594_v52 = vpack.c.bf16 %v379_v45, %v380_v46  ;;  %v1550_v51 = vpack.c.bf16 %v320_v54, %v321_v48  ;;  %v312_v13 = vsel %vm311_vm0, %v309_v18, %v310_v31  ;;  %v2027_v31 = vld [vmem:[#allocation7 + $0xa8] sm:$0xff]   ;;  %v2036_v39 = vld [vmem:[#allocation7 + $0x58] sm:$0xff]   ;;  %v2039_v42 = vld [vmem:[#allocation7 + $0x20] sm:$0xff]  }
  0x8c   : > { %659 = vmatprep.mubr.bf16.mxu0 %v354_v58  ;;  %1893 = vmatpush3.bf16.msra.mxu0 %v2022_v56  ;;  %v393_v56 = vsel %vm377_vm1, %v376_v53, %v361_v33  ;;  %v304_v58 = vrot.slane %v2543_v8, 7  ;;  %v2040_v43 = vld [vmem:[#allocation7 + $0x68] sm:$0xff]   ;;  %v2042_v45 = vld [vmem:[#allocation7 + $0x70] sm:$0xff]   ;;  %v2666_v48 = vld [vmem:[%s3061_s2] ss:$0 sm:$0xff] }
  0x8d   : > { %1877 = vmatmul.mubr.msk.bf16.vlgmr.msra.gmra.mrb[0].mxu1 %vm2493_vm5, %v1574_v1  ;;  %v1598_v61 = vpack.c.bf16 %v393_v56, %v378_v55  ;;  %v319_v1 = vsel %vm311_vm0, %v302_v40, %v303_v60  ;;  %1894 = vmatprep.subr.bf16.mxu0 %v2023_v21  ;;  %v2037_v40 = vld [vmem:[#allocation7 + $0x18] sm:$0xff]   ;;  %v2043_v46 = vld [vmem:[#allocation7 + $0x30] sm:$0xff]  }
  0x8e   : > { %1880 = vmatprep.mubr.msk.bf16.mxu1 %vm2493_vm5, %v1578_v3  ;;  %v318_v63 = vsel %vm311_vm0, %v303_v60, %v304_v58  ;;  %v306_v3 = vrot.slane %v2549_v12, 7  ;;  %v317_v5 = vsel %vm311_vm0, %v304_v58, %v305_v62  ;;  %1780 = vmatprep.subr.bf16.mxu1 %v2030_v28 }
  0x8f   : > { %v1554_v33 = vpack.c.bf16 %v318_v63, %v319_v1 }
  0x90   : > { %v316_v4 = vsel %vm311_vm0, %v305_v62, %v306_v3  ;;  %v315_v11 = vsel %vm311_vm0, %v306_v3, %v307_v0  ;;  %1895 = vmatpush3.bf16.msra.mxu0 %v2023_v21 }
  0x91   : > { %v1558_v6 = vpack.c.bf16 %v316_v4, %v317_v5  ;;  %v1562_v14 = vpack.c.bf16 %v314_v10, %v315_v11 }
  0x93   : > { %1543 = vmatmul.mubr.msk.bf16.gmra.mrb[4].mxu0 %vm2513_vm6, %v1542_v16  ;;  %v360_v16 = vpack.c.bf16 %v2451_v26, %v2558_v15  ;;  %v2024_v15 = vld [vmem:[#allocation7 + $0x90] sm:$0xff]   ;;  %v2026_v26 = vld [vmem:[#allocation7 + $0xa0] sm:$0xff]  }
  0x94   : > { %667 = vmatprep.mubr.bf16.mxu0 %v355_v20  ;;  %v1566_v20 = vpack.c.bf16 %v312_v13, %v313_v19  ;;  %1896 = vmatprep.subr.bf16.mxu0 %v2024_v15 }
  0x95   : > { %1881 = vmatmul.mubr.msk.bf16.gmra.mrb[4].mxu1 %vm2493_vm5, %v1582_v23  ;;  %1897 = vmatpush3.bf16.msra.mxu0 %v2024_v15  ;;  %v2028_v23 = vld [vmem:[#allocation7 + $0xb0] sm:$0xff]  }
  0x96   : > { %1884 = vmatprep.mubr.msk.bf16.mxu1 %vm2493_vm5, %v1586_v30  ;;  %1898 = vmatprep.subr.bf16.mxu0 %v2025_v22  ;;  %v2031_v30 = vld [vmem:[#allocation7] sm:$0xff]  }
  0x97   : > { %1781 = vmatpush3.bf16.msra.mxu1 %v2031_v30 }
  0x98   : > { %1782 = vmatprep.subr.bf16.mxu1 %v2032_v34 }
  0x99   : > { %1899 = vmatpush3.bf16.msra.mxu0 %v2025_v22 }
  0x9a   : > { %1900 = vmatprep.subr.bf16.mxu0 %v2026_v26 }
  0x9b   : > { %1547 = vmatmul.mubr.msk.bf16.gmra.mrb[8].mxu0 %vm2513_vm6, %v1546_v41  ;;  %1783 = vmatpush3.bf16.msra.mxu1 %v2033_v36  ;;  %v2038_v41 = vld [vmem:[#allocation7 + $0x60] sm:$0xff]  }
  0x9c   : > { %675 = vmatprep.mubr.bf16.mxu0 %v356_v44  ;;  %1784 = vmatprep.subr.bf16.mxu1 %v2034_v37  ;;  %v2041_v44 = vld [vmem:[#allocation7 + $0x28] sm:$0xff]  }
  0x9d   : > { %1885 = vmatmul.mubr.msk.bf16.gmra.mrb[8].mxu1 %vm2493_vm5, %v1590_v49  ;;  %1901 = vmatpush3.bf16.msra.mxu0 %v2026_v26  ;;  %v2044_v49 = vld [vmem:[#allocation7 + $0x78] sm:$0xff]  }
  0x9e   : > { %1888 = vmatprep.mubr.msk.bf16.mxu1 %vm2493_vm5, %v1594_v52  ;;  %1902 = vmatprep.subr.bf16.mxu0 %v2027_v31  ;;  %v2045_v52 = vld [vmem:[#allocation7 + $0x38] sm:$0xff]  }
  0x9f   : > { %1785 = vmatpush3.bf16.msra.mxu1 %v2035_v38 }
  0xa0   : > { %1786 = vmatprep.subr.bf16.mxu1 %v2036_v39 }
  0xa1   : > { %1903 = vmatpush3.bf16.msra.mxu0 %v2027_v31 }
  0xa2   : > { %1904 = vmatprep.subr.bf16.mxu0 %v2028_v23 }
  0xa3   : > { %1551 = vmatmul.mubr.msk.bf16.gmra.mrb[12].mxu0 %vm2513_vm6, %v1550_v51  ;;  %1787 = vmatpush3.bf16.msra.mxu1 %v2037_v40 }
  0xa4   : > { %683 = vmatprep.mubr.bf16.mxu0 %v357_v59  ;;  %1788 = vmatprep.subr.bf16.mxu1 %v2038_v41 }
  0xa5   : > { %1889 = vmatmul.mubr.msk.bf16.gmra.mrb[12].mxu1 %vm2493_vm5, %v1598_v61  ;;  %1905 = vmatpush3.bf16.msra.mxu0 %v2028_v23 }
  0xa6   : > { %1906 = vmatprep.subr.bf16.mxu0 %v2029_v27 }
  0xa7   : > { %1789 = vmatpush3.bf16.msra.mxu1 %v2039_v42 }
  0xa8   : > { %1790 = vmatprep.subr.bf16.mxu1 %v2040_v43 }
  0xa9   : > { %1907 = vmatpush3.bf16.msra.mxu0 %v2029_v27 }
  0xab   : > { %1555 = vmatmul.mubr.msk.bf16.gmra.mrb[16].mxu0 %vm2513_vm6, %v1554_v33  ;;  %1791 = vmatpush3.bf16.msra.mxu1 %v2041_v44 }
  0xac   : > { %691 = vmatprep.mubr.bf16.mxu0 %v358_v2  ;;  %1792 = vmatprep.subr.bf16.mxu1 %v2042_v45 }
  0xaf   : > { %1793 = vmatpush3.bf16.msra.mxu1 %v2043_v46 }
  0xb0   : > { %1794 = vmatprep.subr.bf16.mxu1 %v2044_v49 }
  0xb3   : > { %1559 = vmatmul.mubr.msk.bf16.gmra.mrb[20].mxu0 %vm2513_vm6, %v1558_v6  ;;  %1795 = vmatpush3.bf16.msra.mxu1 %v2045_v52 }
  0xb4   : > { %699 = vmatprep.mubr.bf16.mxu0 %v359_v9 }
  0xbb   : > { %1563 = vmatmul.mubr.msk.bf16.gmra.mrb[24].mxu0 %vm2513_vm6, %v1562_v14 }
  0xbc   : > { %707 = vmatprep.mubr.bf16.mxu0 %v360_v16 }
  0xc3   : > { %1567 = vmatmul.mubr.msk.bf16.gmra.mrb[28].mxu0 %vm2513_vm6, %v1566_v20 }
 0x15e   : > { %v1716_v53 = vpop.f32.mrb[0].mxu0 }
 0x15f   : > { %v1717_v54 = vpop.f32.mrb[1].mxu0 }
 0x160   : > { %v1718_v51 = vadd.f32 %v1717_v54, %v1716_v53  ;;  %v1719_v55 = vpop.f32.mrb[2].mxu0  ;;  %v1878_v58 = vpop.f32.mrb[0].mxu1 }
 0x161   : > { %v1720_v56 = vpop.f32.mrb[3].mxu0  ;;  %v750_v61 = vpop.f32.mrb[1].mxu1 }
 0x162   : > { %v1721_v59 = vadd.f32 %v1720_v56, %v1719_v55  ;;  %v654_v60 = vadd.f32 %v1718_v51, %v2666_v48  ;;  %v1879_v63 = vpop.f32.mrb[2].mxu1 }
 0x163   : > { %v753_v2 = vpop.f32.mrb[3].mxu1 }
 0x164   : > { %v751_v1 = vadd.f32 %v750_v61, %v654_v60  ;;  %v657_v33 = vadd.f32 %v1721_v59, %v2666_v48 }
 0x166   : > { %v2670_v62 = vmax.f32 %v751_v1, 0.0  ;;  %v754_v3 = vadd.f32 %v753_v2, %v657_v33  ;;  %v1722_v4 = vpop.f32.mrb[4].mxu0 }
 0x167   : > { %v1723_v5 = vpop.f32.mrb[5].mxu0 }
 0x168   : > { %v814_v6 = vmax.f32 %v754_v3, 0.0  ;;  %v1724_v7 = vadd.f32 %v1723_v5, %v1722_v4  ;;  %v1725_v9 = vpop.f32.mrb[6].mxu0  ;;  %v829_v0 = vrot.slane %v2670_v62, 7  ;;  %v893_v10 = vrot.slane %v2670_v62, 1  ;;  %v2674_v14 = vpop.f32.mrb[4].mxu1 }
 0x169   : > { %v1726_v11 = vpop.f32.mrb[7].mxu0  ;;  %v766_v20 = vpop.f32.mrb[5].mxu1 }
 0x16a   : > { %v830_v16 = vrot.slane %v814_v6, 7  ;;  %v894_v18 = vrot.slane %v814_v6, 1  ;;  %v662_v13 = vadd.f32 %v1724_v7, %v2666_v48  ;;  %v1727_v19 = vadd.f32 %v1726_v11, %v1725_v9  ;;  %v2678_v15 = vpop.f32.mrb[6].mxu1 }
 0x16b   : > { %v885_v21 = vpack.c.bf16 %v814_v6, %v2670_v62  ;;  %v769_v23 = vpop.f32.mrb[7].mxu1 }
 0x16c   : > { %v2684_v22 = vsel %vm311_vm0, %v829_v0, %v830_v16  ;;  %v759_v26 = vadd.f32 %v1878_v58, %v662_v13  ;;  %v665_v31 = vadd.f32 %v1727_v19, %v2666_v48  ;;  %v923_v27 = vsel %vm377_vm1, %v893_v10, %v894_v18 }
 0x16d   : > { %1180 = vmatprep.mubr.bf16.mxu1 %v885_v21 }
 0x16e   : > { %v2691_v28 = vmax.f32 %v759_v26, 0.0  ;;  %v762_v30 = vadd.f32 %v1879_v63, %v665_v31  ;;  %v1728_v34 = vpop.f32.mrb[8].mxu0 }
 0x16f   : > { %v1729_v36 = vpop.f32.mrb[9].mxu0 }
 0x170   : > { %v831_v37 = vrot.slane %v2691_v28, 7  ;;  %v895_v38 = vrot.slane %v2691_v28, 1  ;;  %v2695_v39 = vmax.f32 %v762_v30, 0.0  ;;  %v1730_v40 = vadd.f32 %v1729_v36, %v1728_v34  ;;  %v1731_v41 = vpop.f32.mrb[10].mxu0  ;;  %v2697_v43 = vpop.f32.mrb[8].mxu1 }
 0x171   : > { %v1732_v42 = vpop.f32.mrb[11].mxu0  ;;  %v782_v52 = vpop.f32.mrb[9].mxu1 }
 0x172   : > { %v832_v44 = vrot.slane %v2695_v39, 7  ;;  %v896_v45 = vrot.slane %v2695_v39, 1  ;;  %v1733_v46 = vadd.f32 %v1732_v42, %v1731_v41  ;;  %v670_v49 = vadd.f32 %v1730_v40, %v2666_v48  ;;  %v2704_v54 = vpop.f32.mrb[10].mxu1 }
 0x173   : > { %v922_v53 = vsel %vm377_vm1, %v894_v18, %v895_v38  ;;  %v886_v51 = vpack.c.bf16 %v2695_v39, %v2691_v28  ;;  %v2710_v55 = vsel %vm311_vm0, %v830_v16, %v831_v37  ;;  %v785_v61 = vpop.f32.mrb[11].mxu1 }
 0x174   : > { %v767_v56 = vadd.f32 %v766_v20, %v670_v49  ;;  %v921_v58 = vsel %vm377_vm1, %v895_v38, %v896_v45  ;;  %v673_v59 = vadd.f32 %v1733_v46, %v2666_v48  ;;  %v1659_v60 = vpack.c.bf16 %v922_v53, %v923_v27 }
 0x175   : > { %v2717_v63 = vsel %vm311_vm0, %v831_v37, %v832_v44 }
 0x176   : > { %v2719_v1 = vmax.f32 %v767_v56, 0.0  ;;  %v770_v33 = vadd.f32 %v769_v23, %v673_v59  ;;  %1908 = vmatprep.mubr.msk.bf16.mxu0 %vm2493_vm5, %v1659_v60  ;;  %v1734_v2 = vpop.f32.mrb[12].mxu0  ;;  %v1631_v3 = vpack.c.bf16 %v2717_v63, %v2710_v55 }
 0x177   : > { %v1735_v4 = vpop.f32.mrb[13].mxu0 }
 0x178   : > { %v833_v5 = vrot.slane %v2719_v1, 7  ;;  %v897_v6 = vrot.slane %v2719_v1, 1  ;;  %v2727_v7 = vmax.f32 %v770_v33, 0.0  ;;  %v1736_v9 = vadd.f32 %v1735_v4, %v1734_v2  ;;  %v1737_v11 = vpop.f32.mrb[14].mxu0  ;;  %v2729_v18 = vpop.f32.mrb[12].mxu1 }
 0x179   : > { %v1738_v16 = vpop.f32.mrb[15].mxu0  ;;  %v2736_v26 = vpop.f32.mrb[13].mxu1 }
 0x17a   : > { %v920_v13 = vsel %vm377_vm1, %v896_v45, %v897_v6  ;;  %v834_v19 = vrot.slane %v2727_v7, 7  ;;  %v898_v20 = vrot.slane %v2727_v7, 1  ;;  %v678_v21 = vadd.f32 %v1736_v9, %v2666_v48  ;;  %v2738_v27 = vpop.f32.mrb[14].mxu1 }
 0x17b   : > { %v1663_v31 = vpack.c.bf16 %v920_v13, %v921_v58  ;;  %v1739_v23 = vadd.f32 %v1738_v16, %v1737_v11  ;;  %v887_v30 = vpack.c.bf16 %v2727_v7, %v2719_v1  ;;  %v2744_v34 = vsel %vm311_vm0, %v832_v44, %v833_v5  ;;  %v2749_v38 = vpop.f32.mrb[15].mxu1 }
 0x17c   : > { %v775_v36 = vadd.f32 %v2674_v14, %v678_v21  ;;  %v919_v37 = vsel %vm377_vm1, %v897_v6, %v898_v20  ;;  %v2753_v40 = vsel %vm311_vm0, %v833_v5, %v834_v19 }
 0x17d   : > { %v681_v41 = vadd.f32 %v1739_v23, %v2666_v48  ;;  %1909 = vmatmul.mubr.msk.bf16.vlgmr.msra.gmra.mrb[32].mxu0 %vm2493_vm5, %v1663_v31  ;;  %v1635_v42 = vpack.c.bf16 %v2753_v40, %v2744_v34  ;;  %v2938_v34 = vld [vmem:[%s3063_s4] ss:$0 sm:$0xff] }
 0x17e   : > { %v2760_v44 = vmax.f32 %v775_v36, 0.0  ;;  %v1740_v14 = vpop.f32.mrb[16].mxu0 }
 0x17f   : > { %v778_v45 = vadd.f32 %v2678_v15, %v681_v41  ;;  %v1741_v46 = vpop.f32.mrb[17].mxu0 }
 0x180   : > { %v835_v49 = vrot.slane %v2760_v44, 7  ;;  %v899_v53 = vrot.slane %v2760_v44, 1  ;;  %v1742_v56 = vadd.f32 %v1741_v46, %v1740_v14  ;;  %v1743_v58 = vpop.f32.mrb[18].mxu0 }
 0x181   : > { %v2765_v59 = vmax.f32 %v778_v45, 0.0  ;;  %v1744_v60 = vpop.f32.mrb[19].mxu0 }
 0x182   : > { %v1745_v33 = vadd.f32 %v1744_v60, %v1743_v58  ;;  %v686_v2 = vadd.f32 %v1742_v56, %v2666_v48  ;;  %v918_v4 = vsel %vm377_vm1, %v898_v20, %v899_v53  ;;  %v2772_v5 = vsel %vm311_vm0, %v834_v19, %v835_v49 }
 0x183   : > { %v836_v15 = vrot.slane %v2765_v59, 7  ;;  %v900_v6 = vrot.slane %v2765_v59, 1  ;;  %v1667_v9 = vpack.c.bf16 %v918_v4, %v919_v37  ;;  %v888_v11 = vpack.c.bf16 %v2765_v59, %v2760_v44 }
 0x184   : > { %v783_v16 = vadd.f32 %v782_v52, %v686_v2  ;;  %v689_v13 = vadd.f32 %v1745_v33, %v2666_v48 }
 0x185   : > { %1912 = vmatprep.mubr.msk.bf16.mxu0 %vm2493_vm5, %v1667_v9  ;;  %v917_v20 = vsel %vm377_vm1, %v899_v53, %v900_v6  ;;  %v2785_v19 = vsel %vm311_vm0, %v835_v49, %v836_v15 }
 0x186   : > { %v2787_v21 = vmax.f32 %v783_v16, 0.0  ;;  %v786_v31 = vadd.f32 %v785_v61, %v689_v13  ;;  %v1746_v23 = vpop.f32.mrb[20].mxu0  ;;  %v1639_v36 = vpack.c.bf16 %v2785_v19, %v2772_v5 }
 0x187   : > { %v1747_v52 = vpop.f32.mrb[21].mxu0 }
 0x188   : > { %v837_v37 = vrot.slane %v2787_v21, 7  ;;  %v901_v41 = vrot.slane %v2787_v21, 1  ;;  %v2793_v14 = vmax.f32 %v786_v31, 0.0  ;;  %v1748_v45 = vadd.f32 %v1747_v52, %v1746_v23  ;;  %v1749_v46 = vpop.f32.mrb[22].mxu0 }
 0x189   : > { %v1750_v53 = vpop.f32.mrb[23].mxu0 }
 0x18a   : > { %v838_v49 = vrot.slane %v2793_v14, 7  ;;  %v902_v56 = vrot.slane %v2793_v14, 1  ;;  %v694_v61 = vadd.f32 %v1748_v45, %v2666_v48  ;;  %v1751_v58 = vadd.f32 %v1750_v53, %v1749_v46 }
 0x18b   : > { %v916_v60 = vsel %vm377_vm1, %v900_v6, %v901_v41  ;;  %v2804_v2 = vsel %vm311_vm0, %v836_v15, %v837_v37  ;;  %v3084_v17 = vpack.c.bf16 %v2793_v14, %v2787_v21 }
 0x18c   : > { %v791_v4 = vadd.f32 %v2697_v43, %v694_v61  ;;  %v697_v9 = vadd.f32 %v1751_v58, %v2666_v48  ;;  %v1671_v16 = vpack.c.bf16 %v916_v60, %v917_v20  ;;  %v915_v13 = vsel %vm377_vm1, %v901_v41, %v902_v56 }
 0x18d   : > { %v2812_v31 = vsel %vm311_vm0, %v837_v37, %v838_v49 }
 0x18e   : > { %v2814_v6 = vmax.f32 %v791_v4, 0.0  ;;  %v794_v23 = vadd.f32 %v2704_v54, %v697_v9  ;;  %1913 = vmatmul.mubr.msk.bf16.gmra.mrb[36].mxu0 %vm2493_vm5, %v1671_v16  ;;  %v1752_v15 = vpop.f32.mrb[24].mxu0  ;;  %v3085_v47 = vpack.c.bf16 %v2812_v31, %v2804_v2 }
 0x18f   : > { %v1753_v52 = vpop.f32.mrb[25].mxu0 }
 0x190   : > { %v839_v20 = vrot.slane %v2814_v6, 7  ;;  %v903_v41 = vrot.slane %v2814_v6, 1  ;;  %v2823_v45 = vmax.f32 %v794_v23, 0.0  ;;  %v1754_v37 = vadd.f32 %v1753_v52, %v1752_v15  ;;  %v1755_v46 = vpop.f32.mrb[26].mxu0 }
 0x191   : > { %v1756_v53 = vpop.f32.mrb[27].mxu0 }
 0x192   : > { %v840_v61 = vrot.slane %v2823_v45, 7  ;;  %v904_v54 = vrot.slane %v2823_v45, 1  ;;  %v1757_v58 = vadd.f32 %v1756_v53, %v1755_v46  ;;  %v702_v60 = vadd.f32 %v1754_v37, %v2666_v48 }
 0x193   : > { %v914_v4 = vsel %vm377_vm1, %v902_v56, %v903_v41  ;;  %v890_v9 = vpack.c.bf16 %v2823_v45, %v2814_v6  ;;  %v2834_v16 = vsel %vm311_vm0, %v838_v49, %v839_v20 }
 0x194   : > { %v799_v23 = vadd.f32 %v2736_v26, %v702_v60  ;;  %v705_v15 = vadd.f32 %v1757_v58, %v2666_v48  ;;  %v1675_v52 = vpack.c.bf16 %v914_v4, %v915_v13  ;;  %v913_v46 = vsel %vm377_vm1, %v903_v41, %v904_v54 }
 0x195   : > { %v849_v37 = vsel %vm311_vm0, %v839_v20, %v840_v61 }
 0x196   : > { %v825_v53 = vmax.f32 %v799_v23, 0.0  ;;  %v802_v56 = vadd.f32 %v2749_v38, %v705_v15  ;;  %1916 = vmatprep.mubr.msk.bf16.mxu0 %vm2493_vm5, %v1675_v52  ;;  %v1758_v6 = vpop.f32.mrb[28].mxu0  ;;  %v1647_v49 = vpack.c.bf16 %v849_v37, %v2834_v16 }
 0x197   : > { %v1759_v45 = vpop.f32.mrb[29].mxu0 }
 0x198   : > { %v841_v26 = vrot.slane %v825_v53, 7  ;;  %v905_v60 = vrot.slane %v825_v53, 1  ;;  %v826_v58 = vmax.f32 %v802_v56, 0.0  ;;  %v1760_v13 = vadd.f32 %v1759_v45, %v1758_v6  ;;  %v1761_v4 = vpop.f32.mrb[30].mxu0 }
 0x199   : > { %v1762_v43 = vpop.f32.mrb[31].mxu0 }
 0x19a   : > { %v842_v41 = vrot.slane %v826_v58, 7  ;;  %v906_v33 = vrot.slane %v826_v58, 1  ;;  %v710_v20 = vadd.f32 %v1760_v13, %v2666_v48  ;;  %v1763_v23 = vadd.f32 %v1762_v43, %v1761_v4 }
 0x19b   : > { %v912_v38 = vsel %vm377_vm1, %v904_v54, %v905_v60  ;;  %v891_v15 = vpack.c.bf16 %v826_v58, %v825_v53  ;;  %v848_v52 = vsel %vm311_vm0, %v840_v61, %v841_v26 }
 0x19c   : > { %v807_v16 = vadd.f32 %v2729_v18, %v710_v20  ;;  %v713_v37 = vadd.f32 %v1763_v23, %v2666_v48  ;;  %v1679_v56 = vpack.c.bf16 %v912_v38, %v913_v46  ;;  %v911_v6 = vsel %vm377_vm1, %v905_v60, %v906_v33 }
 0x19d   : > { %v847_v45 = vsel %vm311_vm0, %v841_v26, %v842_v41 }
 0x19e   : > { %v827_v13 = vmax.f32 %v807_v16, 0.0  ;;  %v810_v43 = vadd.f32 %v2738_v27, %v713_v37  ;;  %1917 = vmatmul.mubr.msk.bf16.gmra.mrb[40].mxu0 %vm2493_vm5, %v1679_v56  ;;  %v1651_v54 = vpack.c.bf16 %v847_v45, %v848_v52 }
 0x1a0   : > { %v843_v53 = vrot.slane %v827_v13, 7  ;;  %v907_v61 = vrot.slane %v827_v13, 1  ;;  %v828_v58 = vmax.f32 %v810_v43, 0.0 }
 0x1a2   : > { %v844_v18 = vrot.slane %v828_v58, 7  ;;  %v908_v4 = vrot.slane %v828_v58, 1  ;;  %v910_v48 = vsel %vm377_vm1, %v906_v33, %v907_v61  ;;  %v892_v46 = vpack.c.bf16 %v828_v58, %v827_v13 }
 0x1a3   : > { %v1683_v60 = vpack.c.bf16 %v910_v48, %v911_v6  ;;  %v846_v26 = vsel %vm311_vm0, %v842_v41, %v843_v53 }
 0x1a4   : > { %v860_v27 = vsel %vm311_vm0, %v844_v18, %v829_v0  ;;  %v909_v20 = vsel %vm377_vm1, %v907_v61, %v908_v4  ;;  %v924_v23 = vsel %vm377_vm1, %v908_v4, %v893_v10  ;;  %v845_v33 = vsel %vm311_vm0, %v843_v53, %v844_v18 }
 0x1a5   : > { %v1627_v38 = vpack.c.bf16 %v2684_v22, %v860_v27  ;;  %1920 = vmatprep.mubr.msk.bf16.mxu0 %vm2493_vm5, %v1683_v60  ;;  %v1687_v41 = vpack.c.bf16 %v924_v23, %v909_v20  ;;  %v1655_v52 = vpack.c.bf16 %v845_v33, %v846_v26 }
 0x1a7   : > { %1628 = vmatmul.mubr.msk.bf16.vlgmr.msra.gmra.mrb[16].mxu1 %vm2513_vm6, %v1627_v38  ;;  %1921 = vmatmul.mubr.msk.bf16.gmra.mrb[44].mxu0 %vm2493_vm5, %v1687_v41  ;;  %v2046_v38 = vld [vmem:[%s2431_s6 + $0x20] sm:$0xff] }
 0x1a8   : > { %1188 = vmatprep.mubr.bf16.mxu1 %v886_v51 }
 0x1af   : > { %1632 = vmatmul.mubr.msk.bf16.gmra.mrb[20].mxu1 %vm2513_vm6, %v1631_v3 }
 0x1b0   : > { %1196 = vmatprep.mubr.bf16.mxu1 %v887_v30 }
 0x1b7   : > { %1636 = vmatmul.mubr.msk.bf16.gmra.mrb[24].mxu1 %vm2513_vm6, %v1635_v42 }
 0x1b8   : > { %1204 = vmatprep.mubr.bf16.mxu1 %v888_v11 }
 0x1bf   : > { %1640 = vmatmul.mubr.msk.bf16.gmra.mrb[28].mxu1 %vm2513_vm6, %v1639_v36 }
 0x1c0   : > { %1212 = vmatprep.mubr.bf16.mxu1 %v3084_v17 }
 0x1c7   : > { %1644 = vmatmul.mubr.msk.bf16.gmra.mrb[32].mxu1 %vm2513_vm6, %v3085_v47 }
 0x1c8   : > { %1220 = vmatprep.mubr.bf16.mxu1 %v890_v9 }
 0x1cf   : > { %1648 = vmatmul.mubr.msk.bf16.gmra.mrb[36].mxu1 %vm2513_vm6, %v1647_v49 }
 0x1d0   : > { %1228 = vmatprep.mubr.bf16.mxu1 %v891_v15 }
 0x1d7   : > { %1652 = vmatmul.mubr.msk.bf16.gmra.mrb[40].mxu1 %vm2513_vm6, %v1651_v54 }
 0x1d8   : > { %1236 = vmatprep.mubr.bf16.mxu1 %v892_v46 }
 0x1df   : > { %1656 = vmatmul.mubr.msk.bf16.gmra.mrb[44].mxu1 %vm2513_vm6, %v1655_v52 }
 0x250   : > { %v1910_v62 = vpop.f32.mrb[32].mxu0 }
 0x251   : > { %v1279_v0 = vpop.f32.mrb[33].mxu0 }
 0x252   : > { %v1911_v10 = vpop.f32.mrb[34].mxu0 }
 0x253   : > { %v1282_v22 = vpop.f32.mrb[35].mxu0 }
 0x261   : > { %v2921_v28 = vpop.f32.mrb[36].mxu0 }
 0x262   : > { %v1295_v39 = vpop.f32.mrb[37].mxu0 }
 0x263   : > { %v2923_v51 = vpop.f32.mrb[38].mxu0 }
 0x264   : > { %v1298_v55 = vpop.f32.mrb[39].mxu0 }
 0x271   : > { %v2925_v63 = vpop.f32.mrb[40].mxu0 }
 0x272   : > { %v2927_v1 = vpop.f32.mrb[41].mxu0 }
 0x273   : > { %v2929_v3 = vpop.f32.mrb[42].mxu0 }
 0x274   : > { %v2931_v7 = vpop.f32.mrb[43].mxu0 }
 0x27a   : > { %v1796_v57 = vpop.f32.mrb[16].mxu1  ;;  %v2933_v30 = vpop.f32.mrb[44].mxu0 }
 0x27b   : > { %v1797_v40 = vpop.f32.mrb[17].mxu1  ;;  %v2940_v42 = vpop.f32.mrb[45].mxu0 }
 0x27c   : > { %v1798_v44 = vadd.f32 %v1797_v40, %v1796_v57  ;;  %v1799_v59 = vpop.f32.mrb[18].mxu1  ;;  %v2942_v5 = vpop.f32.mrb[46].mxu0 }
 0x27d   : > { %v1800_v11 = vpop.f32.mrb[19].mxu1  ;;  %v2944_v19 = vpop.f32.mrb[47].mxu0 }
 0x27e   : > { %v1183_v21 = vadd.f32 %v1798_v44, %v2938_v34  ;;  %v1801_v36 = vadd.f32 %v1800_v11, %v1799_v59  ;;  %v2047_v59 = vld [vmem:[%s2431_s6 + $0x30] sm:$0xff] }
 0x280   : > { %v1280_v14 = vadd.f32 %v1279_v0, %v1183_v21  ;;  %v1186_v2 = vadd.f32 %v1801_v36, %v2938_v34 }
 0x282   : > { %v1342_v31 = vadd.f32 %v1280_v14, %v2445_v24  ;;  %v1283_v9 = vadd.f32 %v1282_v22, %v1186_v2  ;;  %v1802_v49 = vpop.f32.mrb[20].mxu1  ;;  %v2048_v2 = vld [vmem:[%s2431_s6 + $0x38] sm:$0xff] }
 0x283   : > { %v1803_v15 = vpop.f32.mrb[21].mxu1 }
 0x284   : > { %v1358_v16 = vmax.f32 %v1342_v31, 0.0  ;;  %v1343_v37 = vadd.f32 %v1283_v9, %v2448_v25  ;;  %v1804_v56 = vadd.f32 %v1803_v15, %v1802_v49  ;;  %v1805_v6 = vpop.f32.mrb[22].mxu1 }
 0x285   : > { %v1806_v45 = vpop.f32.mrb[23].mxu1 }
 0x286   : > { %1374 = vst [vmem:[%s2952_s11] sm:$0xff] %v1358_v16  ;;  %v1359_v13 = vmax.f32 %v1343_v37, 0.0  ;;  %v1191_v43 = vadd.f32 %v1804_v56, %v2938_v34  ;;  %v1807_v24 = vadd.f32 %v1806_v45, %v1805_v6  ;;  %v2049_v6 = vld [vmem:[%s2431_s6 + $0x40] sm:$0xff] }
 0x288   : > { %1375 = vst [vmem:[%s2952_s11 + $0x8] sm:$0xff] %v1359_v13  ;;  %v1288_v54 = vadd.f32 %v1910_v62, %v1191_v43  ;;  %v1194_v53 = vadd.f32 %v1807_v24, %v2938_v34 }
 0x28a   : > { %v1344_v25 = vadd.f32 %v1288_v54, %v2461_v32  ;;  %v1291_v61 = vadd.f32 %v1911_v10, %v1194_v53  ;;  %v1808_v58 = vpop.f32.mrb[24].mxu1 }
 0x28b   : > { %v1809_v18 = vpop.f32.mrb[25].mxu1 }
 0x28c   : > { %v1360_v4 = vmax.f32 %v1344_v25, 0.0  ;;  %v1345_v48 = vadd.f32 %v1291_v61, %v2466_v35  ;;  %v1810_v46 = vadd.f32 %v1809_v18, %v1808_v58  ;;  %v1811_v60 = vpop.f32.mrb[26].mxu1 }
 0x28d   : > { %v1812_v26 = vpop.f32.mrb[27].mxu1 }
 0x28e   : > { %1376 = vst [vmem:[%s2952_s11 + $0x10] sm:$0xff] %v1360_v4  ;;  %v1361_v27 = vmax.f32 %v1345_v48, 0.0  ;;  %v1199_v20 = vadd.f32 %v1810_v46, %v2938_v34  ;;  %v1813_v23 = vadd.f32 %v1812_v26, %v1811_v60  ;;  %v2050_v46 = vld [vmem:[%s2431_s6 + $0x50] sm:$0xff] }
 0x290   : > { %1377 = vst [vmem:[%s2952_s11 + $0x18] sm:$0xff] %v1361_v27  ;;  %v1296_v33 = vadd.f32 %v1295_v39, %v1199_v20  ;;  %v1202_v32 = vadd.f32 %v1813_v23, %v2938_v34 }
 0x292   : > { %v1346_v41 = vadd.f32 %v2046_v38, %v1296_v33  ;;  %v1299_v52 = vadd.f32 %v1298_v55, %v1202_v32  ;;  %v1814_v17 = vpop.f32.mrb[28].mxu1 }
 0x293   : > { %v1815_v35 = vpop.f32.mrb[29].mxu1 }
 0x294   : > { %v1362_v47 = vmax.f32 %v1346_v41, 0.0  ;;  %v1347_v62 = vadd.f32 %v1299_v52, %v2501_v50  ;;  %v1816_v0 = vadd.f32 %v1815_v35, %v1814_v17  ;;  %v1817_v10 = vpop.f32.mrb[30].mxu1  ;;  %v2051_v35 = vld [vmem:[%s2431_s6 + $0x60] sm:$0xff] }
 0x295   : > { %v1818_v22 = vpop.f32.mrb[31].mxu1 }
 0x296   : > { %1378 = vst [vmem:[%s2952_s11 + $0x20] sm:$0xff] %v1362_v47  ;;  %v1363_v57 = vmax.f32 %v1347_v62, 0.0  ;;  %v1207_v39 = vadd.f32 %v1816_v0, %v2938_v34  ;;  %v1819_v40 = vadd.f32 %v1818_v22, %v1817_v10 }
 0x298   : > { %1379 = vst [vmem:[%s2952_s11 + $0x28] sm:$0xff] %v1363_v57  ;;  %v1304_v44 = vadd.f32 %v2921_v28, %v1207_v39  ;;  %v1210_v55 = vadd.f32 %v1819_v40, %v2938_v34 }
 0x29a   : > { %v1348_v11 = vadd.f32 %v2047_v59, %v1304_v44  ;;  %v1307_v50 = vadd.f32 %v2923_v51, %v1210_v55  ;;  %v1820_v21 = vpop.f32.mrb[32].mxu1 }
 0x29b   : > { %v1821_v36 = vpop.f32.mrb[33].mxu1 }
 0x29c   : > { %v1364_v14 = vmax.f32 %v1348_v11, 0.0  ;;  %v1349_v31 = vadd.f32 %v2048_v2, %v1307_v50  ;;  %v1822_v9 = vadd.f32 %v1821_v36, %v1820_v21  ;;  %v1823_v49 = vpop.f32.mrb[34].mxu1  ;;  %v2052_v11 = vld [vmem:[%s2431_s6 + $0x70] sm:$0xff]  ;;  %v2053_v36 = vld [vmem:[%s2431_s6 + $0x78] sm:$0xff] }
 0x29d   : > { %v1824_v15 = vpop.f32.mrb[35].mxu1 }
 0x29e   : > { %1380 = vst [vmem:[%s2952_s11 + $0x30] sm:$0xff] %v1364_v14  ;;  %v1365_v16 = vmax.f32 %v1349_v31, 0.0  ;;  %v1215_v28 = vadd.f32 %v1822_v9, %v2938_v34  ;;  %v1825_v37 = vadd.f32 %v1824_v15, %v1823_v49 }
 0x2a0   : > { %1381 = vst [vmem:[%s2952_s11 + $0x38] sm:$0xff] %v1365_v16  ;;  %v1312_v56 = vadd.f32 %v2927_v1, %v1215_v28  ;;  %v1218_v51 = vadd.f32 %v1825_v37, %v2938_v34 }
 0x2a2   : > { %v1350_v45 = vadd.f32 %v2049_v6, %v1312_v56  ;;  %v1315_v13 = vadd.f32 %v2931_v7, %v1218_v51  ;;  %v1826_v43 = vpop.f32.mrb[36].mxu1 }
 0x2a3   : > { %v1827_v24 = vpop.f32.mrb[37].mxu1 }
 0x2a4   : > { %v1366_v54 = vmax.f32 %v1350_v45, 0.0  ;;  %v1351_v53 = vadd.f32 %v1315_v13, %v2543_v8  ;;  %v1828_v25 = vadd.f32 %v1827_v24, %v1826_v43  ;;  %v1829_v61 = vpop.f32.mrb[38].mxu1 }
 0x2a5   : > { %v1830_v58 = vpop.f32.mrb[39].mxu1 }
 0x2a6   : > { %1382 = vst [vmem:[%s2952_s11 + $0x40] sm:$0xff] %v1366_v54  ;;  %v1367_v18 = vmax.f32 %v1351_v53, 0.0  ;;  %v1223_v1 = vadd.f32 %v1828_v25, %v2938_v34  ;;  %v1831_v4 = vadd.f32 %v1830_v58, %v1829_v61 }
 0x2a8   : > { %1383 = vst [vmem:[%s2952_s11 + $0x48] sm:$0xff] %v1367_v18  ;;  %v1320_v48 = vadd.f32 %v2925_v63, %v1223_v1  ;;  %v1226_v7 = vadd.f32 %v1831_v4, %v2938_v34 }
 0x2aa   : > { %v1352_v60 = vadd.f32 %v2050_v46, %v1320_v48  ;;  %v1323_v8 = vadd.f32 %v2929_v3, %v1226_v7  ;;  %v1832_v26 = vpop.f32.mrb[40].mxu1 }
 0x2ab   : > { %v1833_v27 = vpop.f32.mrb[41].mxu1 }
 0x2ac   : > { %v1368_v20 = vmax.f32 %v1352_v60, 0.0  ;;  %v1353_v23 = vadd.f32 %v1323_v8, %v2549_v12  ;;  %v1834_v33 = vadd.f32 %v1833_v27, %v1832_v26  ;;  %v1835_v32 = vpop.f32.mrb[42].mxu1 }
 0x2ad   : > { %v1836_v38 = vpop.f32.mrb[43].mxu1 }
 0x2ae   : > { %1384 = vst [vmem:[%s2952_s11 + $0x50] sm:$0xff] %v1368_v20  ;;  %v1369_v41 = vmax.f32 %v1353_v23, 0.0  ;;  %v1231_v63 = vadd.f32 %v1834_v33, %v2938_v34  ;;  %v1837_v52 = vadd.f32 %v1836_v38, %v1835_v32 }
 0x2b0   : > { %1385 = vst [vmem:[%s2952_s11 + $0x58] sm:$0xff] %v1369_v41  ;;  %v1328_v17 = vadd.f32 %v2940_v42, %v1231_v63  ;;  %v1234_v3 = vadd.f32 %v1837_v52, %v2938_v34 }
 0x2b2   : > { %v1354_v47 = vadd.f32 %v2051_v35, %v1328_v17  ;;  %v1331_v12 = vadd.f32 %v2944_v19, %v1234_v3  ;;  %v1838_v62 = vpop.f32.mrb[44].mxu1 }
 0x2b3   : > { %v1839_v0 = vpop.f32.mrb[45].mxu1 }
 0x2b4   : > { %v1370_v10 = vmax.f32 %v1354_v47, 0.0  ;;  %v1355_v22 = vadd.f32 %v1331_v12, %v2575_v29  ;;  %v1840_v57 = vadd.f32 %v1839_v0, %v1838_v62  ;;  %v1841_v39 = vpop.f32.mrb[46].mxu1 }
 0x2b5   : > { %v1842_v40 = vpop.f32.mrb[47].mxu1 }
 0x2b6   : > { %1386 = vst [vmem:[%s2952_s11 + $0x60] sm:$0xff] %v1370_v10  ;;  %v1371_v42 = vmax.f32 %v1355_v22, 0.0  ;;  %v1239_v44 = vadd.f32 %v1840_v57, %v2938_v34  ;;  %v1843_v55 = vadd.f32 %v1842_v40, %v1841_v39 }
 0x2b8   : > { %1387 = vst [vmem:[%s2952_s11 + $0x68] sm:$0xff] %v1371_v42  ;;  %v1336_v19 = vadd.f32 %v2933_v30, %v1239_v44  ;;  %v1242_v59 = vadd.f32 %v1843_v55, %v2938_v34 }
 0x2ba   : > { %v1356_v29 = vadd.f32 %v2052_v11, %v1336_v19  ;;  %v1339_v50 = vadd.f32 %v2942_v5, %v1242_v59 }
 0x2bc   : > { %v1372_v21 = vmax.f32 %v1356_v29, 0.0  ;;  %v1357_v14 = vadd.f32 %v2053_v36, %v1339_v50 }
 0x2be   : > { %1388 = vst [vmem:[%s2952_s11 + $0x70] sm:$0xff] %v1372_v21  ;;  %v1373_v30 = vmax.f32 %v1357_v14, 0.0 }
 0x2c0   : > { %1389 = vst [vmem:[%s2952_s11 + $0x78] sm:$0xff] %v1373_v30 }
 0x2c1   : > { %2153 = shalt.err (!%p2150_p2)
}
 0x2c2   : > { %s2154_s6 = scalar_lea.hbm %s3011_s9, 2048  ;;  %s2158_s8 = scalar_lea.hbm %s3064_s5, 4096 }
 0x2c3   : > { %p2155_p13 = scmp.ne.s32.totalorder %s3011_s9, %s2154_s6  ;;  %p2159_p4 = scmp.lt.u32.totalorder %s3011_s9, %s3064_s5 }
 0x2c4   : > { %p2160_p5 = scmp.lt.u32.totalorder %s2158_s8, %s2154_s6  ;;  %p2162_p11 = scmp.lt.u32.totalorder %s2154_s6, %s3011_s9 }
 0x2c5   : > { %p2156_p6 = pnand %p2155_p13, %p3086_p0 }
 0x2c6   : > { %p2161_p8 = por %p2160_p5, %p2159_p4 }
 0x2c7   : > { %p2157_p10 = pneg %p2156_p6 }
 0x2c8   : > { %p2163_p1 = por %p2162_p11, %p2161_p8 }
 0x2ca   : > { %p2164_p3 = pnand %p2163_p1, %p2157_p10 }
 0x2cc   : > { %2167 = shalt.err (!%p2164_p3)
}
 0x2cd   : > { %s2221_s28 = smov 128   ;;  %s2222_s15 = smov 8  }
 0x2ce   : > { %1934 = dma.vmem_to_hbm [thread:$0]  (%p3086_p0), %s3013_s30, 2048, %s3011_s9, %s1391_s12, %s2221_s28, %s2221_s28, %s2222_s15  }
 0x2cf PF: > { %s1420_s16 = sand.u32 1, %s2198_s18   ;;  %p3087_p7 = scmp.ne.s32.totalorder %s3069_s25, 0 }
 0x2d0   : > { %p3088_p9 = scmp.ge.s32.totalorder %s2210_s21, 2  ;;  %s1421_s13 = scalar_lea.sflag [#allocation4], %s1420_s16 }
 0x2d2   : > { %p1948_p12 = pnand %p3088_p9, %p3087_p7 }
 0x2d4   : > { %2193 = dma.done.wait (!%p1948_p12), %s1421_s13, 2048  }
 0x2d5   : > { %2195 = vsyncadd (!%p1948_p12), %s1421_s13, 4294965248  ;;  %p19_p2 = scmp.ge.s32.totalorder %s2363_s14, 4   ;;  %s3089_s18 = smov %s2202_s19 }
 0x2d6   : > { %s3090_s19 = smov %s2206_s20  ;;  %s3091_s20 = smov %s2379_s27 }
 0x2d7   : > { %s3092_s21 = smov %s2363_s14  ;;  %21 = sbr.rel (!%p19_p2) target bundleno = 6 (0x6), region = 93 }
 0x2de   :  { %1426 = vsyncpa [#allocation3], 1 }
 0x2df   :  { %1428 = vsyncpa [#allocation3 + $0x1], 1 }
 0x2e0   :  { %1429 = vsyncpa [#allocation6], 1 }
 0x2e1   :  { %1430 = vsyncpa [#allocation4], 1 }
 0x2e2   :  { %1432 = vsyncpa [#allocation4 + $0x1], 1 }

// kernel: tpu_custom_call.1
= control target key start
LH: loop header
LB: loop body
LE: loop exit
PB: predicated region body
PF: predicated region fallthrough
CT: control target
= control target key end

     0   :  { %10 = vsyncpa [#allocation3], 0  ;;  %s3059_s0 = inlined_call_operand.hbm [shape: f32[16,16,128], index: 0, kind: input, shape index: {}]   ;;  %s3060_s1 = inlined_call_operand.hbm [shape: bf16[384,128], index: 1, kind: input, shape index: {}]   ;;  %s3061_s2 = inlined_call_operand.vmem [shape: f32[1,128], index: 2, kind: input, shape index: {}]   ;;  %s3062_s3 = inlined_call_operand.hbm [shape: bf16[384,128], index: 3, kind: input, shape index: {}]   ;;  %s3063_s4 = inlined_call_operand.vmem [shape: f32[1,128], index: 4, kind: input, shape index: {}]   ;;  %s3064_s5 = inlined_call_operand.hbm [shape: f32[16,16,128], index: 5, kind: output, shape index: {}]  }
   0x1   :  { %12 = vsyncpa [#allocation3 + $0x1], 0 }
   0x2   :  { %13 = vsyncpa [#allocation6], 0 }
   0x3   :  { %14 = vsyncpa [#allocation4], 0 }
   0x4   :  { %16 = vsyncpa [#allocation4 + $0x1], 0  ;;  %s2253_s18 = smov 0   ;;  %s2255_s19 = smov 0  }
   0x5   :  { %s2257_s20 = smov 0   ;;  %s2259_s21 = smov 0  }
   0x6 LB: > { %s2274_s22 = sadd.s32 4294967295, %s2210_s21   ;;  %s1497_s23 = sadd.s32 4294967294, %s2210_s21   ;;  %s2210_s21 = sphi %s2259_s21, %s3092_s21   ;;  %s2206_s20 = sphi %s2257_s20, %s3091_s20   ;;  %s2202_s19 = sphi %s2255_s19, %s3090_s19   ;;  %s2198_s18 = sphi %s2253_s18, %s3089_s18  }
   0x7   : > { %p42_p0 = scmp.ne.s32.totalorder %s2202_s19, %s2198_s18  ;;  %p3065_p1 = scmp.eq.s32.totalorder %s2274_s22, 0 }
   0x8   : > { %p156_p3 = scmp.eq.s32.totalorder %s1497_s23, 1  ;;  %p1498_p5 = scmp.ge.s32.totalorder %s2210_s21, 1 }
   0x9   : > { %p2283_p4 = por %p3065_p1, %p42_p0  ;;  %p163_p7 = scmp.lt.s32.totalorder %s2210_s21, 3 }
   0xa   : > { %p2288_p6 = por %p156_p3, %p42_p0  ;;  %s2212_s27 = smov [#allocation5]  }
   0xb   : > { %s3068_s24 = scalar_select %p2283_p4, 1, 0 }
   0xc   : > { %s3069_s25 = scalar_select %p2288_p6, 1, 0 }
   0xd   : > { %p2293_p8 = pnand %p1498_p5, %p163_p7  ;;  %s175_s28 = sshll.u32 %s2212_s27, 4  ;;  %s2297_s28 = int_to_ptr.vmem [resolvable:$true] %s175_s28 }
   0xe   : > { %s2213_s30 = smov [#allocation7]   ;;  %s2054_s9 = scalar_lea.hbm %s3060_s1, 3072 }
   0xf   : > { %p1936_p9 = pneg %p2293_p8  ;;  %s191_s6 = sshll.u32 %s2213_s30, 4  ;;  %s2308_s6 = int_to_ptr.vmem [resolvable:$true] %s191_s6 }
  0x10   : > { %p2055_p12 = scmp.ne.s32.totalorder %s3060_s1, %s2054_s9  ;;  %p2061_p5 = scmp.lt.u32.totalorder %s2054_s9, %s3060_s1 }
  0x11   : > { %p2304_p11 = pnand %p1936_p9, %p3065_p1 }
  0x13   : > { %p2056_p13 = pneg %p2304_p11 }
  0x15   : > { %p2057_p0 = pnand %p2056_p13, %p2055_p12 }
  0x17   : > { %p2058_p3 = pneg %p2057_p0 }
  0x19   : > { %p2063_p7 = pnand %p2061_p5, %p2058_p3 }
  0x1b   : > { %2066 = shalt.err (!%p2063_p7)
}
  0x1c   : > { %s2067_s14 = scalar_lea.vmem %s2297_s28, 3072  ;;  %p2075_p2 = scmp.lt.s32.totalorder %s2297_s28, %s2297_s28 }
  0x1d   : > { %p2068_p9 = scmp.ne.s32.totalorder %s2297_s28, %s2067_s14  ;;  %p2076_p12 = scmp.lt.s32.totalorder %s2067_s14, %s2067_s14 }
  0x1f   : > { %p2070_p10 = pnand %p2068_p9, %p2056_p13  ;;  %p2077_p0 = por %p2076_p12, %p2075_p2 }
  0x21   : > { %p2071_p1 = pneg %p2070_p10 }
  0x23   : > { %p2078_p6 = pnand %p2077_p0, %p2071_p1 }
  0x25   : > { %2081 = shalt.err (!%p2078_p6)
}
  0x26   : > { %s2214_s15 = smov 64   ;;  %s2215_s16 = smov 4  }
  0x27   : > { %1939 = dma.hbm_to_vmem [thread:$0]  (!%p2304_p11), %s3060_s1, 3072, %s2297_s28, [#allocation6], %s2214_s15, %s2214_s15, %s2215_s16  }
  0x28   : > { %s2082_s7 = scalar_lea.hbm %s3062_s3, 3072 }
  0x29   : > { %p2083_p2 = scmp.ne.s32.totalorder %s3062_s3, %s2082_s7  ;;  %p2089_p10 = scmp.lt.u32.totalorder %s2082_s7, %s3062_s3 }
  0x2b   : > { %p2085_p1 = pnand %p2083_p2, %p2056_p13 }
  0x2d   : > { %p2086_p6 = pneg %p2085_p1 }
  0x2f   : > { %p2091_p3 = pnand %p2089_p10, %p2086_p6 }
  0x31   : > { %2094 = shalt.err (!%p2091_p3)
}
  0x32   : > { %s2095_s28 = scalar_lea.vmem %s2308_s6, 3072  ;;  %p2103_p12 = scmp.lt.s32.totalorder %s2308_s6, %s2308_s6 }
  0x33   : > { %p2096_p5 = scmp.ne.s32.totalorder %s2308_s6, %s2095_s28  ;;  %p2104_p0 = scmp.lt.s32.totalorder %s2095_s28, %s2095_s28 }
  0x35   : > { %p2098_p7 = pnand %p2096_p5, %p2056_p13  ;;  %p2105_p2 = por %p2104_p0, %p2103_p12 }
  0x37   : > { %p2099_p9 = pneg %p2098_p7 }
  0x39   : > { %p2106_p1 = pnand %p2105_p2, %p2099_p9 }
  0x3b   : > { %2109 = shalt.err (!%p2106_p1)
}
  0x3c   : > { %1942 = dma.hbm_to_vmem [thread:$0]  (!%p2304_p11), %s3062_s3, 3072, %s2308_s6, [#allocation6], %s2214_s15, %s2214_s15, %s2215_s16  }
  0x3d   : > { %s2363_s14 = sadd.s32 1, %s2210_s21   ;;  %s29_s29 = sadd.s32 1, %s2206_s20 }
  0x3e   : > { %s26_s17 = ssub.s32 %s2210_s21, %s2363_s14  ;;  %p36_p13 = scmp.ne.s32.totalorder %s2206_s20, %s2202_s19 }
  0x3f   : > { %p27_p6 = scmp.eq.s32.totalorder %s26_s17, 0  ;;  %p37_p10 = scmp.eq.s32.totalorder %s2210_s21, 0 }
  0x40   : > { %p3072_p3 = scmp.eq.s32.totalorder %s2274_s22, 1  ;;  %p1953_p7 = scmp.lt.s32.totalorder %s2210_s21, 2 }
  0x41   : > { %s2379_s27 = scalar_select %p27_p6, %s2206_s20, %s29_s29  }
  0x42   : > { %p2373_p5 = por %p3072_p3, %p36_p13  ;;  %p38_p9 = por %p37_p10, %p36_p13 }
  0x43   : > { %s208_s30 = sand.u32 1, %s2206_s20   ;;  %s1696_s6 = sshll.u32 %s2210_s21, 11 }
  0x44   : > { %s3073_s23 = scalar_select %p2373_p5, 1, 0 }
  0x45   : > { %s1502_s7 = sshll.u32 %s208_s30, 7  ;;  %s2386_s8 = scalar_lea.hbm %s3059_s0, %s1696_s6 }
  0x46   : > { %s212_s9 = scalar_lea.vmem [#allocation2], %s1502_s7  ;;  %p2390_p11 = pnand %p1953_p7, %p38_p9 }
  0x47   : > { %s220_s10 = sshll.u32 %s212_s9, 4  ;;  %s2394_s28 = scalar_lea.sflag [#allocation3], %s208_s30  ;;  %s2388_s10 = int_to_ptr.vmem [resolvable:$true] %s220_s10 }
  0x48   : > { %s2110_s12 = scalar_lea.hbm %s2386_s8, 2048  ;;  %p2112_p0 = pneg %p2390_p11 }
  0x49   : > { %p2111_p12 = scmp.ne.s32.totalorder %s2386_s8, %s2110_s12  ;;  %s2115_s17 = scalar_lea.hbm %s3059_s0, 4096 }
  0x4a   : > { %p2116_p13 = scmp.lt.u32.totalorder %s2386_s8, %s3059_s0  ;;  %p2117_p6 = scmp.lt.u32.totalorder %s2115_s17, %s2110_s12 }
  0x4b   : > { %p2113_p2 = pnand %p2112_p0, %p2111_p12  ;;  %p2119_p3 = scmp.lt.u32.totalorder %s2110_s12, %s2386_s8 }
  0x4c   : > { %p2118_p10 = por %p2117_p6, %p2116_p13 }
  0x4d   : > { %p2114_p1 = pneg %p2113_p2 }
  0x4e   : > { %p2120_p7 = por %p2119_p3, %p2118_p10 }
  0x50   : > { %p2121_p9 = pnand %p2120_p7, %p2114_p1 }
  0x52   : > { %2124 = shalt.err (!%p2121_p9)
}
  0x53   : > { %s2125_s30 = scalar_lea.vmem %s2388_s10, 2048  ;;  %s2216_s15 = smov [#allocation2]  }
  0x54   : > { %p2126_p12 = scmp.ne.s32.totalorder %s2388_s10, %s2125_s30  ;;  %s2130_s16 = sshll.u32 %s2216_s15, 4  ;;  %s2131_s16 = int_to_ptr.vmem [resolvable:$false] %s2130_s16 }
  0x55   : > { %s2132_s9 = scalar_lea.vmem %s2131_s16, 4096  ;;  %p2133_p4 = scmp.lt.s32.totalorder %s2388_s10, %s2131_s16 }
  0x56   : > { %p2128_p2 = pnand %p2126_p12, %p2112_p0  ;;  %p2134_p13 = scmp.lt.s32.totalorder %s2132_s9, %s2125_s30 }
  0x58   : > { %p2129_p5 = pneg %p2128_p2  ;;  %p2135_p6 = por %p2134_p13, %p2133_p4 }
  0x5a   : > { %p2136_p10 = pnand %p2135_p6, %p2129_p5 }
  0x5c   : > { %2139 = shalt.err (!%p2136_p10)
}
  0x5d   : > { %s2217_s12 = smov 128   ;;  %s2218_s13 = smov 8  }
  0x5e   : > { %1946 = dma.hbm_to_vmem [thread:$0]  (!%p2390_p11), %s2386_s8, 2048, %s2388_s10, %s2394_s28, %s2217_s12, %s2217_s12, %s2218_s13  }
  0x5f   : > { %232 = sbr.rel (%p2293_p8) target bundleno = 719 (0x2cf), region = 40  ;;  %s2425_s29 = sand.u32 (!%p2293_p8), 1, %s2202_s19  }
  0x60   : > { %s1507_s17 = sshll.u32 (!%p2293_p8), %s2425_s29, 7  ;;  %s235_s7 = scalar_lea.sflag (!%p2293_p8), [#allocation3], %s2425_s29 }
  0x61   : > { %s2431_s6 = scalar_lea.vmem (!%p2293_p8), [#allocation2], %s1507_s17  ;;  %p3075_p4 = scmp.ne.s32.totalorder (!%p2293_p8), %s3068_s24, 0 }
  0x66   : > { %2185 = dma.done.wait (%p3075_p4), %s235_s7, 2048  }
  0x67   : > { %2187 = vsyncadd (%p3075_p4), %s235_s7, 4294965248  ;;  %p3076_p5 = scmp.eq.s32.totalorder %s2274_s22, 0 }
  0x69   : > { %2189 = dma.done.wait (%p3076_p5), [#allocation6], 6144   ;;  %p3077_p8 = pmov %p3076_p5 }
  0x6a   : > { %v1998_v0 = vld [vmem:[#allocation5 + $0x40] sm:$0xff]   ;;  %v2000_v2 = vld [vmem:[#allocation5 + $0x48] sm:$0xff]   ;;  %v2003_v5 = vld [vmem:[#allocation5 + $0x50] sm:$0xff]   ;;  %v292_v13 = vlaneseq  ;;  %vm2219_vm4 = vmmov 1   ;;  %s2952_s11 = scalar_lea.vmem [#allocation8], %s1507_s17  ;;  %s1698_s28 = sshll.u32 %s2274_s22, 11 }
  0x6b   : > { %2191 = vsyncadd (%p3077_p8), [#allocation6], 4294961152  ;;  %v1999_v1 = vld [vmem:[#allocation5] sm:$0xff]   ;;  %1700 = vmatprep.subr.bf16.mxu0 %v1998_v0  ;;  %v2002_v4 = vld [vmem:[#allocation5 + $0x8] sm:$0xff]   ;;  %s1405_s30 = sshll.u32 %s2952_s11, 4  ;;  %s3011_s9 = scalar_lea.hbm %s3064_s5, %s1698_s28  ;;  %s3013_s30 = int_to_ptr.vmem [resolvable:$true] %s1405_s30 }
  0x6c   : > { %1701 = vmatpush3.bf16.msra.mxu0 %v1999_v1  ;;  %v2001_v3 = vld [vmem:[#allocation5 + $0x80] sm:$0xff]   ;;  %v2004_v6 = vld [vmem:[#allocation5 + $0x88] sm:$0xff]   ;;  %v2005_v7 = vld [vmem:[#allocation5 + $0x10] sm:$0xff]   ;;  %v2441_v17 = vshrl.u32 %v292_v13, 7  ;;  %s1391_s12 = scalar_lea.sflag [#allocation4], %s2425_s29  ;;  %s2140_s13 = scalar_lea.vmem %s3013_s30, 2048 }
  0x6d   : > { %1702 = vmatprep.subr.bf16.mxu0 %v2000_v2  ;;  %1860 = vmatprep.subr.bf16.mxu1 %v2001_v3  ;;  %v2006_v8 = vld [vmem:[#allocation5 + $0x58] sm:$0xff]   ;;  %v2007_v9 = vld [vmem:[#allocation5 + $0x90] sm:$0xff]   ;;  %v2009_v11 = vld [vmem:[#allocation5 + $0x60] sm:$0xff]   ;;  %p2141_p11 = scmp.ne.s32.totalorder %s3013_s30, %s2140_s13  ;;  %p3086_p0 = scmp.ne.s32.totalorder %s3073_s23, 0 }
  0x6e   : > { %1861 = vmatpush3.bf16.msra.mxu1 %v2001_v3  ;;  %v2008_v10 = vld [vmem:[#allocation5 + $0x18] sm:$0xff]   ;;  %v2011_v14 = vld [vmem:[#allocation5 + $0x20] sm:$0xff]   ;;  %v2012_v16 = vld [vmem:[#allocation5 + $0x68] sm:$0xff]   ;;  %v294_v20 = vadd.s32 8, %v2441_v17  ;;  %vm311_vm0 = vcmp.lt.s32.totalorder %v2441_v17, 1  ;;  %vm377_vm1 = vcmp.lt.s32.totalorder %v2441_v17, 7 }
  0x6f   : > { %1862 = vmatprep.subr.bf16.mxu1 %v2004_v6  ;;  %v2010_v12 = vld [vmem:[#allocation5 + $0x98] sm:$0xff]   ;;  %v2013_v15 = vld [vmem:[#allocation5 + $0xa0] sm:$0xff]   ;;  %v2014_v18 = vld [vmem:[#allocation5 + $0x28] sm:$0xff]   ;;  %p2142_p1 = pnand %p2141_p11, %p3086_p0  ;;  %s2220_s22 = smov [#allocation8]  }
  0x70   : > { %1703 = vmatpush3.bf16.msra.mxu0 %v2002_v4  ;;  %v2016_v19 = vld [vmem:[#allocation5 + $0xa8] sm:$0xff]   ;;  %v2015_v21 = vld [vmem:[#allocation5 + $0x70] sm:$0xff]   ;;  %v2445_v24 = vld [vmem:[%s2431_s6] sm:$0xff]  ;;  %vm1699_vm2 = vcmp.lt.s32.totalorder %v294_v20, 15  ;;  %s2144_s17 = sshll.u32 %s2220_s22, 4  ;;  %s2145_s17 = int_to_ptr.vmem [resolvable:$false] %s2144_s17 }
  0x71   : > { %1704 = vmatprep.subr.bf16.mxu0 %v2003_v5  ;;  %v2017_v22 = vld [vmem:[#allocation5 + $0x30] sm:$0xff]   ;;  %v2448_v25 = vld [vmem:[%s2431_s6 + $0x8] sm:$0xff]  ;;  %v2451_v26 = vld [vmem:[%s2431_s6 + $0x78] sm:$0xff]  ;;  %v295_v28 = vrot.slane %v2445_v24, 7  ;;  %v361_v33 = vrot.slane %v2445_v24, 1  ;;  %p2143_p3 = pneg %p2142_p1  ;;  %s2146_s7 = scalar_lea.vmem %s2145_s17, 4096 }
  0x72   : > { %1863 = vmatpush3.bf16.msra.mxu1 %v2004_v6  ;;  %v2019_v23 = vld [vmem:[#allocation5 + $0xb0] sm:$0xff]   ;;  %v2018_v27 = vld [vmem:[#allocation5 + $0x78] sm:$0xff]   ;;  %v296_v29 = vrot.slane %v2448_v25, 7  ;;  %v353_v30 = vpack.c.bf16 %v2448_v25, %v2445_v24  ;;  %v310_v31 = vrot.slane %v2451_v26, 7  ;;  %v362_v34 = vrot.slane %v2448_v25, 1  ;;  %v2470_v37 = vld [vmem:[%s2431_s6 + $0x20] sm:$0xff]  ;;  %p2147_p7 = scmp.lt.s32.totalorder %s3013_s30, %s2145_s17  ;;  %p2148_p9 = scmp.lt.s32.totalorder %s2146_s7, %s2140_s13 }
  0x73   : > { %1864 = vmatprep.subr.bf16.mxu1 %v2007_v9  ;;  %v2461_v32 = vld [vmem:[%s2431_s6 + $0x10] sm:$0xff]  ;;  %v2466_v35 = vld [vmem:[%s2431_s6 + $0x18] sm:$0xff]  ;;  %vm2481_vm3 = vmneg %vm311_vm0  ;;  %v365_v45 = vrot.slane %v2470_v37, 1 }
  0x74   : > { %1705 = vmatpush3.bf16.msra.mxu0 %v2005_v7  ;;  %651 = vmatprep.mubr.bf16.mxu0 %v353_v30  ;;  %v363_v36 = vrot.slane %v2461_v32, 1  ;;  %v364_v38 = vrot.slane %v2466_v35, 1  ;;  %v2020_v39 = vld [vmem:[#allocation5 + $0x38] sm:$0xff]   ;;  %v326_v40 = vsel %vm311_vm0, %v295_v28, %v296_v29  ;;  %v327_v41 = vsel %vm311_vm0, %v310_v31, %v295_v28  ;;  %vm2493_vm5 = vmpackc.low %vm1699_vm2, %vm2219_vm4  ;;  %v2498_v48 = vld [vmem:[%s2431_s6 + $0x30] sm:$0xff]  ;;  %p2149_p12 = por %p2148_p9, %p2147_p7 }
  0x75   : > { %1706 = vmatprep.subr.bf16.mxu0 %v2006_v8  ;;  %v2021_v43 = vld [vmem:[#allocation5 + $0xb8] sm:$0xff]   ;;  %v392_v44 = vsel %vm377_vm1, %v361_v33, %v362_v34  ;;  %v2501_v50 = vld [vmem:[%s2431_s6 + $0x28] sm:$0xff]  ;;  %v1538_v52 = vpack.c.bf16 %v326_v40, %v327_v41  ;;  %v2022_v56 = vld [vmem:[#allocation7 + $0x80] sm:$0xff]   ;;  %v354_v58 = vpack.c.bf16 %v2466_v35, %v2461_v32  ;;  %v297_v59 = vrot.slane %v2461_v32, 7 }
  0x76   : > { %1865 = vmatpush3.bf16.msra.mxu1 %v2007_v9  ;;  %v391_v46 = vsel %vm377_vm1, %v362_v34, %v363_v36  ;;  %v2504_v51 = vld [vmem:[%s2431_s6 + $0x38] sm:$0xff]  ;;  %v389_v53 = vsel %vm377_vm1, %v364_v38, %v365_v45  ;;  %v390_v54 = vsel %vm377_vm1, %v363_v36, %v364_v38  ;;  %v366_v55 = vrot.slane %v2501_v50, 1  ;;  %vm2513_vm6 = vmpackc.low %vm2219_vm4, %vm2481_vm3  ;;  %v2523_v62 = vld [vmem:[%s2431_s6 + $0x40] sm:$0xff]  ;;  %p2150_p2 = pnand %p2149_p12, %p2143_p3 }
  0x77   : > { %1866 = vmatprep.subr.bf16.mxu1 %v2010_v12  ;;  %v1570_v49 = vpack.c.bf16 %v391_v46, %v392_v44  ;;  %v298_v60 = vrot.slane %v2466_v35, 7  ;;  %v367_v61 = vrot.slane %v2498_v48, 1  ;;  %v2530_v0 = vld [vmem:[%s2431_s6 + $0x50] sm:$0xff]  ;;  %v1574_v1 = vpack.c.bf16 %v389_v53, %v390_v54  ;;  %v2543_v8 = vld [vmem:[%s2431_s6 + $0x48] sm:$0xff]  ;;  %v2552_v13 = vld [vmem:[%s2431_s6 + $0x60] sm:$0xff] }
  0x78   : > { %1707 = vmatpush3.bf16.msra.mxu0 %v2008_v10  ;;  %v388_v63 = vsel %vm377_vm1, %v365_v45, %v366_v55  ;;  %v368_v4 = vrot.slane %v2504_v51, 1  ;;  %v369_v5 = vrot.slane %v2523_v62, 1  ;;  %v325_v7 = vsel %vm311_vm0, %v296_v29, %v297_v59  ;;  %v2575_v29 = vld [vmem:[%s2431_s6 + $0x68] sm:$0xff] }
  0x79   : > { %1708 = vmatprep.subr.bf16.mxu0 %v2009_v11  ;;  %1876 = vmatprep.mubr.msk.bf16.mxu1 %vm2493_vm5, %v1570_v49  ;;  %v387_v2 = vsel %vm377_vm1, %v366_v55, %v367_v61  ;;  %v324_v6 = vsel %vm311_vm0, %v297_v59, %v298_v60  ;;  %v300_v9 = vrot.slane %v2501_v50, 7  ;;  %v370_v10 = vrot.slane %v2543_v8, 1 }
  0x7a   : > { %1867 = vmatpush3.bf16.msra.mxu1 %v2010_v12  ;;  %v1578_v3 = vpack.c.bf16 %v387_v2, %v388_v63  ;;  %v371_v11 = vrot.slane %v2530_v0, 1  ;;  %v2549_v12 = vld [vmem:[%s2431_s6 + $0x58] sm:$0xff]  ;;  %v355_v20 = vpack.c.bf16 %v2501_v50, %v2470_v37  ;;  %v373_v28 = vrot.slane %v2552_v13, 1 }
  0x7b   : > { %1868 = vmatprep.subr.bf16.mxu1 %v2013_v15  ;;  %v374_v34 = vrot.slane %v2575_v29, 1  ;;  %v302_v40 = vrot.slane %v2504_v51, 7  ;;  %v356_v44 = vpack.c.bf16 %v2504_v51, %v2498_v48  ;;  %v376_v53 = vrot.slane %v2451_v26, 1 }
  0x7c   : > { %1709 = vmatpush3.bf16.msra.mxu0 %v2011_v14  ;;  %v299_v14 = vrot.slane %v2470_v37, 7  ;;  %v357_v59 = vpack.c.bf16 %v2543_v8, %v2523_v62  ;;  %v358_v2 = vpack.c.bf16 %v2549_v12, %v2530_v0 }
  0x7d   : > { %1710 = vmatprep.subr.bf16.mxu0 %v2012_v16  ;;  %v1542_v16 = vpack.c.bf16 %v324_v6, %v325_v7  ;;  %v380_v46 = vsel %vm377_vm1, %v373_v28, %v374_v34  ;;  %v308_v7 = vrot.slane %v2575_v29, 7 }
  0x7e   : > { %1869 = vmatpush3.bf16.msra.mxu1 %v2013_v15  ;;  %v2558_v15 = vld [vmem:[%s2431_s6 + $0x70] sm:$0xff]  ;;  %v322_v37 = vsel %vm311_vm0, %v299_v14, %v300_v9  ;;  %v323_v38 = vsel %vm311_vm0, %v298_v60, %v299_v14  ;;  %v303_v60 = vrot.slane %v2523_v62, 7  ;;  %v305_v62 = vrot.slane %v2530_v0, 7 }
  0x7f   : > { %1870 = vmatprep.subr.bf16.mxu1 %v2016_v19  ;;  %v375_v36 = vrot.slane %v2558_v15, 1  ;;  %v1546_v41 = vpack.c.bf16 %v322_v37, %v323_v38  ;;  %v307_v0 = vrot.slane %v2552_v13, 7  ;;  %v2034_v37 = vld [vmem:[#allocation7 + $0x50] sm:$0xff]  }
  0x80   : > { %1711 = vmatpush3.bf16.msra.mxu0 %v2014_v18  ;;  %v385_v18 = vsel %vm377_vm1, %v368_v4, %v369_v5  ;;  %v2035_v38 = vld [vmem:[#allocation7 + $0x10] sm:$0xff]  }
  0x81   : > { %1712 = vmatprep.subr.bf16.mxu0 %v2015_v21  ;;  %v383_v21 = vsel %vm377_vm1, %v370_v10, %v371_v11  ;;  %v379_v45 = vsel %vm377_vm1, %v374_v34, %v375_v36  ;;  %v378_v55 = vsel %vm377_vm1, %v375_v36, %v376_v53  ;;  %v2032_v34 = vld [vmem:[#allocation7 + $0x48] sm:$0xff]  }
  0x82   : > { %1871 = vmatpush3.bf16.msra.mxu1 %v2016_v19  ;;  %v386_v19 = vsel %vm377_vm1, %v367_v61, %v368_v4  ;;  %v2033_v36 = vld [vmem:[#allocation7 + $0x8] sm:$0xff]  }
  0x83   : > { %1872 = vmatprep.subr.bf16.mxu1 %v2019_v23 }
  0x84   : > { %1713 = vmatpush3.bf16.msra.mxu0 %v2017_v22  ;;  %v384_v22 = vsel %vm377_vm1, %v369_v5, %v370_v10  ;;  %v314_v10 = vsel %vm311_vm0, %v307_v0, %v308_v7 }
  0x85   : > { %1714 = vmatprep.subr.bf16.mxu0 %v2018_v27  ;;  %v372_v27 = vrot.slane %v2549_v12, 1  ;;  %v1586_v30 = vpack.c.bf16 %v383_v21, %v384_v22  ;;  %v2023_v21 = vld [vmem:[#allocation7 + $0x88] sm:$0xff]   ;;  %v2025_v22 = vld [vmem:[#allocation7 + $0x98] sm:$0xff]  }
  0x86   : > { %1873 = vmatpush3.bf16.msra.mxu1 %v2019_v23  ;;  %v1582_v23 = vpack.c.bf16 %v385_v18, %v386_v19  ;;  %v309_v18 = vrot.slane %v2558_v15, 7 }
  0x87   : > { %1874 = vmatprep.subr.bf16.mxu1 %v2021_v43  ;;  %v381_v42 = vsel %vm377_vm1, %v372_v27, %v373_v28  ;;  %v2030_v28 = vld [vmem:[#allocation7 + $0x40] sm:$0xff]  }
  0x88   : > { %1715 = vmatpush3.bf16.msra.mxu0 %v2020_v39  ;;  %v301_v39 = vrot.slane %v2498_v48, 7  ;;  %v313_v19 = vsel %vm311_vm0, %v308_v7, %v309_v18 }
  0x89   : > { %1892 = vmatprep.subr.bf16.mxu0 %v2022_v56 }
  0x8a   : > { %1875 = vmatpush3.bf16.msra.mxu1 %v2021_v43  ;;  %v382_v43 = vsel %vm377_vm1, %v371_v11, %v372_v27  ;;  %v320_v54 = vsel %vm311_vm0, %v301_v39, %v302_v40  ;;  %v321_v48 = vsel %vm311_vm0, %v300_v9, %v301_v39  ;;  %v359_v9 = vpack.c.bf16 %v2575_v29, %v2552_v13  ;;  %v2029_v27 = vld [vmem:[#allocation7 + $0xb8] sm:$0xff]  }
  0x8b   : > { %1539 = vmatmul.mubr.msk.bf16.vlgmr.msra.gmra.mrb[0].mxu0 %vm2513_vm6, %v1538_v52  ;;  %v1590_v49 = vpack.c.bf16 %v381_v42, %v382_v43  ;;  %v1594_v52 = vpack.c.bf16 %v379_v45, %v380_v46  ;;  %v1550_v51 = vpack.c.bf16 %v320_v54, %v321_v48  ;;  %v312_v13 = vsel %vm311_vm0, %v309_v18, %v310_v31  ;;  %v2027_v31 = vld [vmem:[#allocation7 + $0xa8] sm:$0xff]   ;;  %v2036_v39 = vld [vmem:[#allocation7 + $0x58] sm:$0xff]   ;;  %v2039_v42 = vld [vmem:[#allocation7 + $0x20] sm:$0xff]  }
  0x8c   : > { %659 = vmatprep.mubr.bf16.mxu0 %v354_v58  ;;  %1893 = vmatpush3.bf16.msra.mxu0 %v2022_v56  ;;  %v393_v56 = vsel %vm377_vm1, %v376_v53, %v361_v33  ;;  %v304_v58 = vrot.slane %v2543_v8, 7  ;;  %v2040_v43 = vld [vmem:[#allocation7 + $0x68] sm:$0xff]   ;;  %v2042_v45 = vld [vmem:[#allocation7 + $0x70] sm:$0xff]   ;;  %v2666_v48 = vld [vmem:[%s3061_s2] ss:$0 sm:$0xff] }
  0x8d   : > { %1877 = vmatmul.mubr.msk.bf16.vlgmr.msra.gmra.mrb[0].mxu1 %vm2493_vm5, %v1574_v1  ;;  %v1598_v61 = vpack.c.bf16 %v393_v56, %v378_v55  ;;  %v319_v1 = vsel %vm311_vm0, %v302_v40, %v303_v60  ;;  %1894 = vmatprep.subr.bf16.mxu0 %v2023_v21  ;;  %v2037_v40 = vld [vmem:[#allocation7 + $0x18] sm:$0xff]   ;;  %v2043_v46 = vld [vmem:[#allocation7 + $0x30] sm:$0xff]  }
  0x8e   : > { %1880 = vmatprep.mubr.msk.bf16.mxu1 %vm2493_vm5, %v1578_v3  ;;  %v318_v63 = vsel %vm311_vm0, %v303_v60, %v304_v58  ;;  %v306_v3 = vrot.slane %v2549_v12, 7  ;;  %v317_v5 = vsel %vm311_vm0, %v304_v58, %v305_v62  ;;  %1780 = vmatprep.subr.bf16.mxu1 %v2030_v28 }
  0x8f   : > { %v1554_v33 = vpack.c.bf16 %v318_v63, %v319_v1 }
  0x90   : > { %v316_v4 = vsel %vm311_vm0, %v305_v62, %v306_v3  ;;  %v315_v11 = vsel %vm311_vm0, %v306_v3, %v307_v0  ;;  %1895 = vmatpush3.bf16.msra.mxu0 %v2023_v21 }
  0x91   : > { %v1558_v6 = vpack.c.bf16 %v316_v4, %v317_v5  ;;  %v1562_v14 = vpack.c.bf16 %v314_v10, %v315_v11 }
  0x93   : > { %1543 = vmatmul.mubr.msk.bf16.gmra.mrb[4].mxu0 %vm2513_vm6, %v1542_v16  ;;  %v360_v16 = vpack.c.bf16 %v2451_v26, %v2558_v15  ;;  %v2024_v15 = vld [vmem:[#allocation7 + $0x90] sm:$0xff]   ;;  %v2026_v26 = vld [vmem:[#allocation7 + $0xa0] sm:$0xff]  }
  0x94   : > { %667 = vmatprep.mubr.bf16.mxu0 %v355_v20  ;;  %v1566_v20 = vpack.c.bf16 %v312_v13, %v313_v19  ;;  %1896 = vmatprep.subr.bf16.mxu0 %v2024_v15 }
  0x95   : > { %1881 = vmatmul.mubr.msk.bf16.gmra.mrb[4].mxu1 %vm2493_vm5, %v1582_v23  ;;  %1897 = vmatpush3.bf16.msra.mxu0 %v2024_v15  ;;  %v2028_v23 = vld [vmem:[#allocation7 + $0xb0] sm:$0xff]  }
  0x96   : > { %1884 = vmatprep.mubr.msk.bf16.mxu1 %vm2493_vm5, %v1586_v30  ;;  %1898 = vmatprep.subr.bf16.mxu0 %v2025_v22  ;;  %v2031_v30 = vld [vmem:[#allocation7] sm:$0xff]  }
  0x97   : > { %1781 = vmatpush3.bf16.msra.mxu1 %v2031_v30 }
  0x98   : > { %1782 = vmatprep.subr.bf16.mxu1 %v2032_v34 }
  0x99   : > { %1899 = vmatpush3.bf16.msra.mxu0 %v2025_v22 }
  0x9a   : > { %1900 = vmatprep.subr.bf16.mxu0 %v2026_v26 }
  0x9b   : > { %1547 = vmatmul.mubr.msk.bf16.gmra.mrb[8].mxu0 %vm2513_vm6, %v1546_v41  ;;  %1783 = vmatpush3.bf16.msra.mxu1 %v2033_v36  ;;  %v2038_v41 = vld [vmem:[#allocation7 + $0x60] sm:$0xff]  }
  0x9c   : > { %675 = vmatprep.mubr.bf16.mxu0 %v356_v44  ;;  %1784 = vmatprep.subr.bf16.mxu1 %v2034_v37  ;;  %v2041_v44 = vld [vmem:[#allocation7 + $0x28] sm:$0xff]  }
  0x9d   : > { %1885 = vmatmul.mubr.msk.bf16.gmra.mrb[8].mxu1 %vm2493_vm5, %v1590_v49  ;;  %1901 = vmatpush3.bf16.msra.mxu0 %v2026_v26  ;;  %v2044_v49 = vld [vmem:[#allocation7 + $0x78] sm:$0xff]  }
  0x9e   : > { %1888 = vmatprep.mubr.msk.bf16.mxu1 %vm2493_vm5, %v1594_v52  ;;  %1902 = vmatprep.subr.bf16.mxu0 %v2027_v31  ;;  %v2045_v52 = vld [vmem:[#allocation7 + $0x38] sm:$0xff]  }
  0x9f   : > { %1785 = vmatpush3.bf16.msra.mxu1 %v2035_v38 }
  0xa0   : > { %1786 = vmatprep.subr.bf16.mxu1 %v2036_v39 }
  0xa1   : > { %1903 = vmatpush3.bf16.msra.mxu0 %v2027_v31 }
  0xa2   : > { %1904 = vmatprep.subr.bf16.mxu0 %v2028_v23 }
  0xa3   : > { %1551 = vmatmul.mubr.msk.bf16.gmra.mrb[12].mxu0 %vm2513_vm6, %v1550_v51  ;;  %1787 = vmatpush3.bf16.msra.mxu1 %v2037_v40 }
  0xa4   : > { %683 = vmatprep.mubr.bf16.mxu0 %v357_v59  ;;  %1788 = vmatprep.subr.bf16.mxu1 %v2038_v41 }
  0xa5   : > { %1889 = vmatmul.mubr.msk.bf16.gmra.mrb[12].mxu1 %vm2493_vm5, %v1598_v61  ;;  %1905 = vmatpush3.bf16.msra.mxu0 %v2028_v23 }
  0xa6   : > { %1906 = vmatprep.subr.bf16.mxu0 %v2029_v27 }
  0xa7   : > { %1789 = vmatpush3.bf16.msra.mxu1 %v2039_v42 }
  0xa8   : > { %1790 = vmatprep.subr.bf16.mxu1 %v2040_v43 }
  0xa9   : > { %1907 = vmatpush3.bf16.msra.mxu0 %v2029_v27 }
  0xab   : > { %1555 = vmatmul.mubr.msk.bf16.gmra.mrb[16].mxu0 %vm2513_vm6, %v1554_v33  ;;  %1791 = vmatpush3.bf16.msra.mxu1 %v2041_v44 }
  0xac   : > { %691 = vmatprep.mubr.bf16.mxu0 %v358_v2  ;;  %1792 = vmatprep.subr.bf16.mxu1 %v2042_v45 }
  0xaf   : > { %1793 = vmatpush3.bf16.msra.mxu1 %v2043_v46 }
  0xb0   : > { %1794 = vmatprep.subr.bf16.mxu1 %v2044_v49 }
  0xb3   : > { %1559 = vmatmul.mubr.msk.bf16.gmra.mrb[20].mxu0 %vm2513_vm6, %v1558_v6  ;;  %1795 = vmatpush3.bf16.msra.mxu1 %v2045_v52 }
  0xb4   : > { %699 = vmatprep.mubr.bf16.mxu0 %v359_v9 }
  0xbb   : > { %1563 = vmatmul.mubr.msk.bf16.gmra.mrb[24].mxu0 %vm2513_vm6, %v1562_v14 }
  0xbc   : > { %707 = vmatprep.mubr.bf16.mxu0 %v360_v16 }
  0xc3   : > { %1567 = vmatmul.mubr.msk.bf16.gmra.mrb[28].mxu0 %vm2513_vm6, %v1566_v20 }
 0x15e   : > { %v1716_v53 = vpop.f32.mrb[0].mxu0 }
 0x15f   : > { %v1717_v54 = vpop.f32.mrb[1].mxu0 }
 0x160   : > { %v1718_v51 = vadd.f32 %v1717_v54, %v1716_v53  ;;  %v1719_v55 = vpop.f32.mrb[2].mxu0  ;;  %v1878_v58 = vpop.f32.mrb[0].mxu1 }
 0x161   : > { %v1720_v56 = vpop.f32.mrb[3].mxu0  ;;  %v750_v61 = vpop.f32.mrb[1].mxu1 }
 0x162   : > { %v1721_v59 = vadd.f32 %v1720_v56, %v1719_v55  ;;  %v654_v60 = vadd.f32 %v1718_v51, %v2666_v48  ;;  %v1879_v63 = vpop.f32.mrb[2].mxu1 }
 0x163   : > { %v753_v2 = vpop.f32.mrb[3].mxu1 }
 0x164   : > { %v751_v1 = vadd.f32 %v750_v61, %v654_v60  ;;  %v657_v33 = vadd.f32 %v1721_v59, %v2666_v48 }
 0x166   : > { %v2670_v62 = vmax.f32 %v751_v1, 0.0  ;;  %v754_v3 = vadd.f32 %v753_v2, %v657_v33  ;;  %v1722_v4 = vpop.f32.mrb[4].mxu0 }
 0x167   : > { %v1723_v5 = vpop.f32.mrb[5].mxu0 }
 0x168   : > { %v814_v6 = vmax.f32 %v754_v3, 0.0  ;;  %v1724_v7 = vadd.f32 %v1723_v5, %v1722_v4  ;;  %v1725_v9 = vpop.f32.mrb[6].mxu0  ;;  %v829_v0 = vrot.slane %v2670_v62, 7  ;;  %v893_v10 = vrot.slane %v2670_v62, 1  ;;  %v2674_v14 = vpop.f32.mrb[4].mxu1 }
 0x169   : > { %v1726_v11 = vpop.f32.mrb[7].mxu0  ;;  %v766_v20 = vpop.f32.mrb[5].mxu1 }
 0x16a   : > { %v830_v16 = vrot.slane %v814_v6, 7  ;;  %v894_v18 = vrot.slane %v814_v6, 1  ;;  %v662_v13 = vadd.f32 %v1724_v7, %v2666_v48  ;;  %v1727_v19 = vadd.f32 %v1726_v11, %v1725_v9  ;;  %v2678_v15 = vpop.f32.mrb[6].mxu1 }
 0x16b   : > { %v885_v21 = vpack.c.bf16 %v814_v6, %v2670_v62  ;;  %v769_v23 = vpop.f32.mrb[7].mxu1 }
 0x16c   : > { %v2684_v22 = vsel %vm311_vm0, %v829_v0, %v830_v16  ;;  %v759_v26 = vadd.f32 %v1878_v58, %v662_v13  ;;  %v665_v31 = vadd.f32 %v1727_v19, %v2666_v48  ;;  %v923_v27 = vsel %vm377_vm1, %v893_v10, %v894_v18 }
 0x16d   : > { %1180 = vmatprep.mubr.bf16.mxu1 %v885_v21 }
 0x16e   : > { %v2691_v28 = vmax.f32 %v759_v26, 0.0  ;;  %v762_v30 = vadd.f32 %v1879_v63, %v665_v31  ;;  %v1728_v34 = vpop.f32.mrb[8].mxu0 }
 0x16f   : > { %v1729_v36 = vpop.f32.mrb[9].mxu0 }
 0x170   : > { %v831_v37 = vrot.slane %v2691_v28, 7  ;;  %v895_v38 = vrot.slane %v2691_v28, 1  ;;  %v2695_v39 = vmax.f32 %v762_v30, 0.0  ;;  %v1730_v40 = vadd.f32 %v1729_v36, %v1728_v34  ;;  %v1731_v41 = vpop.f32.mrb[10].mxu0  ;;  %v2697_v43 = vpop.f32.mrb[8].mxu1 }
 0x171   : > { %v1732_v42 = vpop.f32.mrb[11].mxu0  ;;  %v782_v52 = vpop.f32.mrb[9].mxu1 }
 0x172   : > { %v832_v44 = vrot.slane %v2695_v39, 7  ;;  %v896_v45 = vrot.slane %v2695_v39, 1  ;;  %v1733_v46 = vadd.f32 %v1732_v42, %v1731_v41  ;;  %v670_v49 = vadd.f32 %v1730_v40, %v2666_v48  ;;  %v2704_v54 = vpop.f32.mrb[10].mxu1 }
 0x173   : > { %v922_v53 = vsel %vm377_vm1, %v894_v18, %v895_v38  ;;  %v886_v51 = vpack.c.bf16 %v2695_v39, %v2691_v28  ;;  %v2710_v55 = vsel %vm311_vm0, %v830_v16, %v831_v37  ;;  %v785_v61 = vpop.f32.mrb[11].mxu1 }
 0x174   : > { %v767_v56 = vadd.f32 %v766_v20, %v670_v49  ;;  %v921_v58 = vsel %vm377_vm1, %v895_v38, %v896_v45  ;;  %v673_v59 = vadd.f32 %v1733_v46, %v2666_v48  ;;  %v1659_v60 = vpack.c.bf16 %v922_v53, %v923_v27 }
 0x175   : > { %v2717_v63 = vsel %vm311_vm0, %v831_v37, %v832_v44 }
 0x176   : > { %v2719_v1 = vmax.f32 %v767_v56, 0.0  ;;  %v770_v33 = vadd.f32 %v769_v23, %v673_v59  ;;  %1908 = vmatprep.mubr.msk.bf16.mxu0 %vm2493_vm5, %v1659_v60  ;;  %v1734_v2 = vpop.f32.mrb[12].mxu0  ;;  %v1631_v3 = vpack.c.bf16 %v2717_v63, %v2710_v55 }
 0x177   : > { %v1735_v4 = vpop.f32.mrb[13].mxu0 }
 0x178   : > { %v833_v5 = vrot.slane %v2719_v1, 7  ;;  %v897_v6 = vrot.slane %v2719_v1, 1  ;;  %v2727_v7 = vmax.f32 %v770_v33, 0.0  ;;  %v1736_v9 = vadd.f32 %v1735_v4, %v1734_v2  ;;  %v1737_v11 = vpop.f32.mrb[14].mxu0  ;;  %v2729_v18 = vpop.f32.mrb[12].mxu1 }
 0x179   : > { %v1738_v16 = vpop.f32.mrb[15].mxu0  ;;  %v2736_v26 = vpop.f32.mrb[13].mxu1 }
 0x17a   : > { %v920_v13 = vsel %vm377_vm1, %v896_v45, %v897_v6  ;;  %v834_v19 = vrot.slane %v2727_v7, 7  ;;  %v898_v20 = vrot.slane %v2727_v7, 1  ;;  %v678_v21 = vadd.f32 %v1736_v9, %v2666_v48  ;;  %v2738_v27 = vpop.f32.mrb[14].mxu1 }
 0x17b   : > { %v1663_v31 = vpack.c.bf16 %v920_v13, %v921_v58  ;;  %v1739_v23 = vadd.f32 %v1738_v16, %v1737_v11  ;;  %v887_v30 = vpack.c.bf16 %v2727_v7, %v2719_v1  ;;  %v2744_v34 = vsel %vm311_vm0, %v832_v44, %v833_v5  ;;  %v2749_v38 = vpop.f32.mrb[15].mxu1 }
 0x17c   : > { %v775_v36 = vadd.f32 %v2674_v14, %v678_v21  ;;  %v919_v37 = vsel %vm377_vm1, %v897_v6, %v898_v20  ;;  %v2753_v40 = vsel %vm311_vm0, %v833_v5, %v834_v19 }
 0x17d   : > { %v681_v41 = vadd.f32 %v1739_v23, %v2666_v48  ;;  %1909 = vmatmul.mubr.msk.bf16.vlgmr.msra.gmra.mrb[32].mxu0 %vm2493_vm5, %v1663_v31  ;;  %v1635_v42 = vpack.c.bf16 %v2753_v40, %v2744_v34  ;;  %v2938_v34 = vld [vmem:[%s3063_s4] ss:$0 sm:$0xff] }
 0x17e   : > { %v2760_v44 = vmax.f32 %v775_v36, 0.0  ;;  %v1740_v14 = vpop.f32.mrb[16].mxu0 }
 0x17f   : > { %v778_v45 = vadd.f32 %v2678_v15, %v681_v41  ;;  %v1741_v46 = vpop.f32.mrb[17].mxu0 }
 0x180   : > { %v835_v49 = vrot.slane %v2760_v44, 7  ;;  %v899_v53 = vrot.slane %v2760_v44, 1  ;;  %v1742_v56 = vadd.f32 %v1741_v46, %v1740_v14  ;;  %v1743_v58 = vpop.f32.mrb[18].mxu0 }
 0x181   : > { %v2765_v59 = vmax.f32 %v778_v45, 0.0  ;;  %v1744_v60 = vpop.f32.mrb[19].mxu0 }
 0x182   : > { %v1745_v33 = vadd.f32 %v1744_v60, %v1743_v58  ;;  %v686_v2 = vadd.f32 %v1742_v56, %v2666_v48  ;;  %v918_v4 = vsel %vm377_vm1, %v898_v20, %v899_v53  ;;  %v2772_v5 = vsel %vm311_vm0, %v834_v19, %v835_v49 }
 0x183   : > { %v836_v15 = vrot.slane %v2765_v59, 7  ;;  %v900_v6 = vrot.slane %v2765_v59, 1  ;;  %v1667_v9 = vpack.c.bf16 %v918_v4, %v919_v37  ;;  %v888_v11 = vpack.c.bf16 %v2765_v59, %v2760_v44 }
 0x184   : > { %v783_v16 = vadd.f32 %v782_v52, %v686_v2  ;;  %v689_v13 = vadd.f32 %v1745_v33, %v2666_v48 }
 0x185   : > { %1912 = vmatprep.mubr.msk.bf16.mxu0 %vm2493_vm5, %v1667_v9  ;;  %v917_v20 = vsel %vm377_vm1, %v899_v53, %v900_v6  ;;  %v2785_v19 = vsel %vm311_vm0, %v835_v49, %v836_v15 }
 0x186   : > { %v2787_v21 = vmax.f32 %v783_v16, 0.0  ;;  %v786_v31 = vadd.f32 %v785_v61, %v689_v13  ;;  %v1746_v23 = vpop.f32.mrb[20].mxu0  ;;  %v1639_v36 = vpack.c.bf16 %v2785_v19, %v2772_v5 }
 0x187   : > { %v1747_v52 = vpop.f32.mrb[21].mxu0 }
 0x188   : > { %v837_v37 = vrot.slane %v2787_v21, 7  ;;  %v901_v41 = vrot.slane %v2787_v21, 1  ;;  %v2793_v14 = vmax.f32 %v786_v31, 0.0  ;;  %v1748_v45 = vadd.f32 %v1747_v52, %v1746_v23  ;;  %v1749_v46 = vpop.f32.mrb[22].mxu0 }
 0x189   : > { %v1750_v53 = vpop.f32.mrb[23].mxu0 }
 0x18a   : > { %v838_v49 = vrot.slane %v2793_v14, 7  ;;  %v902_v56 = vrot.slane %v2793_v14, 1  ;;  %v694_v61 = vadd.f32 %v1748_v45, %v2666_v48  ;;  %v1751_v58 = vadd.f32 %v1750_v53, %v1749_v46 }
 0x18b   : > { %v916_v60 = vsel %vm377_vm1, %v900_v6, %v901_v41  ;;  %v2804_v2 = vsel %vm311_vm0, %v836_v15, %v837_v37  ;;  %v3084_v17 = vpack.c.bf16 %v2793_v14, %v2787_v21 }
 0x18c   : > { %v791_v4 = vadd.f32 %v2697_v43, %v694_v61  ;;  %v697_v9 = vadd.f32 %v1751_v58, %v2666_v48  ;;  %v1671_v16 = vpack.c.bf16 %v916_v60, %v917_v20  ;;  %v915_v13 = vsel %vm377_vm1, %v901_v41, %v902_v56 }
 0x18d   : > { %v2812_v31 = vsel %vm311_vm0, %v837_v37, %v838_v49 }
 0x18e   : > { %v2814_v6 = vmax.f32 %v791_v4, 0.0  ;;  %v794_v23 = vadd.f32 %v2704_v54, %v697_v9  ;;  %1913 = vmatmul.mubr.msk.bf16.gmra.mrb[36].mxu0 %vm2493_vm5, %v1671_v16  ;;  %v1752_v15 = vpop.f32.mrb[24].mxu0  ;;  %v3085_v47 = vpack.c.bf16 %v2812_v31, %v2804_v2 }
 0x18f   : > { %v1753_v52 = vpop.f32.mrb[25].mxu0 }
 0x190   : > { %v839_v20 = vrot.slane %v2814_v6, 7  ;;  %v903_v41 = vrot.slane %v2814_v6, 1  ;;  %v2823_v45 = vmax.f32 %v794_v23, 0.0  ;;  %v1754_v37 = vadd.f32 %v1753_v52, %v1752_v15  ;;  %v1755_v46 = vpop.f32.mrb[26].mxu0 }
 0x191   : > { %v1756_v53 = vpop.f32.mrb[27].mxu0 }
 0x192   : > { %v840_v61 = vrot.slane %v2823_v45, 7  ;;  %v904_v54 = vrot.slane %v2823_v45, 1  ;;  %v1757_v58 = vadd.f32 %v1756_v53, %v1755_v46  ;;  %v702_v60 = vadd.f32 %v1754_v37, %v2666_v48 }
 0x193   : > { %v914_v4 = vsel %vm377_vm1, %v902_v56, %v903_v41  ;;  %v890_v9 = vpack.c.bf16 %v2823_v45, %v2814_v6  ;;  %v2834_v16 = vsel %vm311_vm0, %v838_v49, %v839_v20 }
 0x194   : > { %v799_v23 = vadd.f32 %v2736_v26, %v702_v60  ;;  %v705_v15 = vadd.f32 %v1757_v58, %v2666_v48  ;;  %v1675_v52 = vpack.c.bf16 %v914_v4, %v915_v13  ;;  %v913_v46 = vsel %vm377_vm1, %v903_v41, %v904_v54 }
 0x195   : > { %v849_v37 = vsel %vm311_vm0, %v839_v20, %v840_v61 }
 0x196   : > { %v825_v53 = vmax.f32 %v799_v23, 0.0  ;;  %v802_v56 = vadd.f32 %v2749_v38, %v705_v15  ;;  %1916 = vmatprep.mubr.msk.bf16.mxu0 %vm2493_vm5, %v1675_v52  ;;  %v1758_v6 = vpop.f32.mrb[28].mxu0  ;;  %v1647_v49 = vpack.c.bf16 %v849_v37, %v2834_v16 }
 0x197   : > { %v1759_v45 = vpop.f32.mrb[29].mxu0 }
 0x198   : > { %v841_v26 = vrot.slane %v825_v53, 7  ;;  %v905_v60 = vrot.slane %v825_v53, 1  ;;  %v826_v58 = vmax.f32 %v802_v56, 0.0  ;;  %v1760_v13 = vadd.f32 %v1759_v45, %v1758_v6  ;;  %v1761_v4 = vpop.f32.mrb[30].mxu0 }
 0x199   : > { %v1762_v43 = vpop.f32.mrb[31].mxu0 }
 0x19a   : > { %v842_v41 = vrot.slane %v826_v58, 7  ;;  %v906_v33 = vrot.slane %v826_v58, 1  ;;  %v710_v20 = vadd.f32 %v1760_v13, %v2666_v48  ;;  %v1763_v23 = vadd.f32 %v1762_v43, %v1761_v4 }
 0x19b   : > { %v912_v38 = vsel %vm377_vm1, %v904_v54, %v905_v60  ;;  %v891_v15 = vpack.c.bf16 %v826_v58, %v825_v53  ;;  %v848_v52 = vsel %vm311_vm0, %v840_v61, %v841_v26 }
 0x19c   : > { %v807_v16 = vadd.f32 %v2729_v18, %v710_v20  ;;  %v713_v37 = vadd.f32 %v1763_v23, %v2666_v48  ;;  %v1679_v56 = vpack.c.bf16 %v912_v38, %v913_v46  ;;  %v911_v6 = vsel %vm377_vm1, %v905_v60, %v906_v33 }
 0x19d   : > { %v847_v45 = vsel %vm311_vm0, %v841_v26, %v842_v41 }
 0x19e   : > { %v827_v13 = vmax.f32 %v807_v16, 0.0  ;;  %v810_v43 = vadd.f32 %v2738_v27, %v713_v37  ;;  %1917 = vmatmul.mubr.msk.bf16.gmra.mrb[40].mxu0 %vm2493_vm5, %v1679_v56  ;;  %v1651_v54 = vpack.c.bf16 %v847_v45, %v848_v52 }
 0x1a0   : > { %v843_v53 = vrot.slane %v827_v13, 7  ;;  %v907_v61 = vrot.slane %v827_v13, 1  ;;  %v828_v58 = vmax.f32 %v810_v43, 0.0 }
 0x1a2   : > { %v844_v18 = vrot.slane %v828_v58, 7  ;;  %v908_v4 = vrot.slane %v828_v58, 1  ;;  %v910_v48 = vsel %vm377_vm1, %v906_v33, %v907_v61  ;;  %v892_v46 = vpack.c.bf16 %v828_v58, %v827_v13 }
 0x1a3   : > { %v1683_v60 = vpack.c.bf16 %v910_v48, %v911_v6  ;;  %v846_v26 = vsel %vm311_vm0, %v842_v41, %v843_v53 }
 0x1a4   : > { %v860_v27 = vsel %vm311_vm0, %v844_v18, %v829_v0  ;;  %v909_v20 = vsel %vm377_vm1, %v907_v61, %v908_v4  ;;  %v924_v23 = vsel %vm377_vm1, %v908_v4, %v893_v10  ;;  %v845_v33 = vsel %vm311_vm0, %v843_v53, %v844_v18 }
 0x1a5   : > { %v1627_v38 = vpack.c.bf16 %v2684_v22, %v860_v27  ;;  %1920 = vmatprep.mubr.msk.bf16.mxu0 %vm2493_vm5, %v1683_v60  ;;  %v1687_v41 = vpack.c.bf16 %v924_v23, %v909_v20  ;;  %v1655_v52 = vpack.c.bf16 %v845_v33, %v846_v26 }
 0x1a7   : > { %1628 = vmatmul.mubr.msk.bf16.vlgmr.msra.gmra.mrb[16].mxu1 %vm2513_vm6, %v1627_v38  ;;  %1921 = vmatmul.mubr.msk.bf16.gmra.mrb[44].mxu0 %vm2493_vm5, %v1687_v41  ;;  %v2046_v38 = vld [vmem:[%s2431_s6 + $0x20] sm:$0xff] }
 0x1a8   : > { %1188 = vmatprep.mubr.bf16.mxu1 %v886_v51 }
 0x1af   : > { %1632 = vmatmul.mubr.msk.bf16.gmra.mrb[20].mxu1 %vm2513_vm6, %v1631_v3 }
 0x1b0   : > { %1196 = vmatprep.mubr.bf16.mxu1 %v887_v30 }
 0x1b7   : > { %1636 = vmatmul.mubr.msk.bf16.gmra.mrb[24].mxu1 %vm2513_vm6, %v1635_v42 }
 0x1b8   : > { %1204 = vmatprep.mubr.bf16.mxu1 %v888_v11 }
 0x1bf   : > { %1640 = vmatmul.mubr.msk.bf16.gmra.mrb[28].mxu1 %vm2513_vm6, %v1639_v36 }
 0x1c0   : > { %1212 = vmatprep.mubr.bf16.mxu1 %v3084_v17 }
 0x1c7   : > { %1644 = vmatmul.mubr.msk.bf16.gmra.mrb[32].mxu1 %vm2513_vm6, %v3085_v47 }
 0x1c8   : > { %1220 = vmatprep.mubr.bf16.mxu1 %v890_v9 }
 0x1cf   : > { %1648 = vmatmul.mubr.msk.bf16.gmra.mrb[36].mxu1 %vm2513_vm6, %v1647_v49 }
 0x1d0   : > { %1228 = vmatprep.mubr.bf16.mxu1 %v891_v15 }
 0x1d7   : > { %1652 = vmatmul.mubr.msk.bf16.gmra.mrb[40].mxu1 %vm2513_vm6, %v1651_v54 }
 0x1d8   : > { %1236 = vmatprep.mubr.bf16.mxu1 %v892_v46 }
 0x1df   : > { %1656 = vmatmul.mubr.msk.bf16.gmra.mrb[44].mxu1 %vm2513_vm6, %v1655_v52 }
 0x250   : > { %v1910_v62 = vpop.f32.mrb[32].mxu0 }
 0x251   : > { %v1279_v0 = vpop.f32.mrb[33].mxu0 }
 0x252   : > { %v1911_v10 = vpop.f32.mrb[34].mxu0 }
 0x253   : > { %v1282_v22 = vpop.f32.mrb[35].mxu0 }
 0x261   : > { %v2921_v28 = vpop.f32.mrb[36].mxu0 }
 0x262   : > { %v1295_v39 = vpop.f32.mrb[37].mxu0 }
 0x263   : > { %v2923_v51 = vpop.f32.mrb[38].mxu0 }
 0x264   : > { %v1298_v55 = vpop.f32.mrb[39].mxu0 }
 0x271   : > { %v2925_v63 = vpop.f32.mrb[40].mxu0 }
 0x272   : > { %v2927_v1 = vpop.f32.mrb[41].mxu0 }
 0x273   : > { %v2929_v3 = vpop.f32.mrb[42].mxu0 }
 0x274   : > { %v2931_v7 = vpop.f32.mrb[43].mxu0 }
 0x27a   : > { %v1796_v57 = vpop.f32.mrb[16].mxu1  ;;  %v2933_v30 = vpop.f32.mrb[44].mxu0 }
 0x27b   : > { %v1797_v40 = vpop.f32.mrb[17].mxu1  ;;  %v2940_v42 = vpop.f32.mrb[45].mxu0 }
 0x27c   : > { %v1798_v44 = vadd.f32 %v1797_v40, %v1796_v57  ;;  %v1799_v59 = vpop.f32.mrb[18].mxu1  ;;  %v2942_v5 = vpop.f32.mrb[46].mxu0 }
 0x27d   : > { %v1800_v11 = vpop.f32.mrb[19].mxu1  ;;  %v2944_v19 = vpop.f32.mrb[47].mxu0 }
 0x27e   : > { %v1183_v21 = vadd.f32 %v1798_v44, %v2938_v34  ;;  %v1801_v36 = vadd.f32 %v1800_v11, %v1799_v59  ;;  %v2047_v59 = vld [vmem:[%s2431_s6 + $0x30] sm:$0xff] }
 0x280   : > { %v1280_v14 = vadd.f32 %v1279_v0, %v1183_v21  ;;  %v1186_v2 = vadd.f32 %v1801_v36, %v2938_v34 }
 0x282   : > { %v1342_v31 = vadd.f32 %v1280_v14, %v2445_v24  ;;  %v1283_v9 = vadd.f32 %v1282_v22, %v1186_v2  ;;  %v1802_v49 = vpop.f32.mrb[20].mxu1  ;;  %v2048_v2 = vld [vmem:[%s2431_s6 + $0x38] sm:$0xff] }
 0x283   : > { %v1803_v15 = vpop.f32.mrb[21].mxu1 }
 0x284   : > { %v1358_v16 = vmax.f32 %v1342_v31, 0.0  ;;  %v1343_v37 = vadd.f32 %v1283_v9, %v2448_v25  ;;  %v1804_v56 = vadd.f32 %v1803_v15, %v1802_v49  ;;  %v1805_v6 = vpop.f32.mrb[22].mxu1 }
 0x285   : > { %v1806_v45 = vpop.f32.mrb[23].mxu1 }
 0x286   : > { %1374 = vst [vmem:[%s2952_s11] sm:$0xff] %v1358_v16  ;;  %v1359_v13 = vmax.f32 %v1343_v37, 0.0  ;;  %v1191_v43 = vadd.f32 %v1804_v56, %v2938_v34  ;;  %v1807_v24 = vadd.f32 %v1806_v45, %v1805_v6  ;;  %v2049_v6 = vld [vmem:[%s2431_s6 + $0x40] sm:$0xff] }
 0x288   : > { %1375 = vst [vmem:[%s2952_s11 + $0x8] sm:$0xff] %v1359_v13  ;;  %v1288_v54 = vadd.f32 %v1910_v62, %v1191_v43  ;;  %v1194_v53 = vadd.f32 %v1807_v24, %v2938_v34 }
 0x28a   : > { %v1344_v25 = vadd.f32 %v1288_v54, %v2461_v32  ;;  %v1291_v61 = vadd.f32 %v1911_v10, %v1194_v53  ;;  %v1808_v58 = vpop.f32.mrb[24].mxu1 }
 0x28b   : > { %v1809_v18 = vpop.f32.mrb[25].mxu1 }
 0x28c   : > { %v1360_v4 = vmax.f32 %v1344_v25, 0.0  ;;  %v1345_v48 = vadd.f32 %v1291_v61, %v2466_v35  ;;  %v1810_v46 = vadd.f32 %v1809_v18, %v1808_v58  ;;  %v1811_v60 = vpop.f32.mrb[26].mxu1 }
 0x28d   : > { %v1812_v26 = vpop.f32.mrb[27].mxu1 }
 0x28e   : > { %1376 = vst [vmem:[%s2952_s11 + $0x10] sm:$0xff] %v1360_v4  ;;  %v1361_v27 = vmax.f32 %v1345_v48, 0.0  ;;  %v1199_v20 = vadd.f32 %v1810_v46, %v2938_v34  ;;  %v1813_v23 = vadd.f32 %v1812_v26, %v1811_v60  ;;  %v2050_v46 = vld [vmem:[%s2431_s6 + $0x50] sm:$0xff] }
 0x290   : > { %1377 = vst [vmem:[%s2952_s11 + $0x18] sm:$0xff] %v1361_v27  ;;  %v1296_v33 = vadd.f32 %v1295_v39, %v1199_v20  ;;  %v1202_v32 = vadd.f32 %v1813_v23, %v2938_v34 }
 0x292   : > { %v1346_v41 = vadd.f32 %v2046_v38, %v1296_v33  ;;  %v1299_v52 = vadd.f32 %v1298_v55, %v1202_v32  ;;  %v1814_v17 = vpop.f32.mrb[28].mxu1 }
 0x293   : > { %v1815_v35 = vpop.f32.mrb[29].mxu1 }
 0x294   : > { %v1362_v47 = vmax.f32 %v1346_v41, 0.0  ;;  %v1347_v62 = vadd.f32 %v1299_v52, %v2501_v50  ;;  %v1816_v0 = vadd.f32 %v1815_v35, %v1814_v17  ;;  %v1817_v10 = vpop.f32.mrb[30].mxu1  ;;  %v2051_v35 = vld [vmem:[%s2431_s6 + $0x60] sm:$0xff] }
 0x295   : > { %v1818_v22 = vpop.f32.mrb[31].mxu1 }
 0x296   : > { %1378 = vst [vmem:[%s2952_s11 + $0x20] sm:$0xff] %v1362_v47  ;;  %v1363_v57 = vmax.f32 %v1347_v62, 0.0  ;;  %v1207_v39 = vadd.f32 %v1816_v0, %v2938_v34  ;;  %v1819_v40 = vadd.f32 %v1818_v22, %v1817_v10 }
 0x298   : > { %1379 = vst [vmem:[%s2952_s11 + $0x28] sm:$0xff] %v1363_v57  ;;  %v1304_v44 = vadd.f32 %v2921_v28, %v1207_v39  ;;  %v1210_v55 = vadd.f32 %v1819_v40, %v2938_v34 }
 0x29a   : > { %v1348_v11 = vadd.f32 %v2047_v59, %v1304_v44  ;;  %v1307_v50 = vadd.f32 %v2923_v51, %v1210_v55  ;;  %v1820_v21 = vpop.f32.mrb[32].mxu1 }
 0x29b   : > { %v1821_v36 = vpop.f32.mrb[33].mxu1 }
 0x29c   : > { %v1364_v14 = vmax.f32 %v1348_v11, 0.0  ;;  %v1349_v31 = vadd.f32 %v2048_v2, %v1307_v50  ;;  %v1822_v9 = vadd.f32 %v1821_v36, %v1820_v21  ;;  %v1823_v49 = vpop.f32.mrb[34].mxu1  ;;  %v2052_v11 = vld [vmem:[%s2431_s6 + $0x70] sm:$0xff]  ;;  %v2053_v36 = vld [vmem:[%s2431_s6 + $0x78] sm:$0xff] }
 0x29d   : > { %v1824_v15 = vpop.f32.mrb[35].mxu1 }
 0x29e   : > { %1380 = vst [vmem:[%s2952_s11 + $0x30] sm:$0xff] %v1364_v14  ;;  %v1365_v16 = vmax.f32 %v1349_v31, 0.0  ;;  %v1215_v28 = vadd.f32 %v1822_v9, %v2938_v34  ;;  %v1825_v37 = vadd.f32 %v1824_v15, %v1823_v49 }
 0x2a0   : > { %1381 = vst [vmem:[%s2952_s11 + $0x38] sm:$0xff] %v1365_v16  ;;  %v1312_v56 = vadd.f32 %v2927_v1, %v1215_v28  ;;  %v1218_v51 = vadd.f32 %v1825_v37, %v2938_v34 }
 0x2a2   : > { %v1350_v45 = vadd.f32 %v2049_v6, %v1312_v56  ;;  %v1315_v13 = vadd.f32 %v2931_v7, %v1218_v51  ;;  %v1826_v43 = vpop.f32.mrb[36].mxu1 }
 0x2a3   : > { %v1827_v24 = vpop.f32.mrb[37].mxu1 }
 0x2a4   : > { %v1366_v54 = vmax.f32 %v1350_v45, 0.0  ;;  %v1351_v53 = vadd.f32 %v1315_v13, %v2543_v8  ;;  %v1828_v25 = vadd.f32 %v1827_v24, %v1826_v43  ;;  %v1829_v61 = vpop.f32.mrb[38].mxu1 }
 0x2a5   : > { %v1830_v58 = vpop.f32.mrb[39].mxu1 }
 0x2a6   : > { %1382 = vst [vmem:[%s2952_s11 + $0x40] sm:$0xff] %v1366_v54  ;;  %v1367_v18 = vmax.f32 %v1351_v53, 0.0  ;;  %v1223_v1 = vadd.f32 %v1828_v25, %v2938_v34  ;;  %v1831_v4 = vadd.f32 %v1830_v58, %v1829_v61 }
 0x2a8   : > { %1383 = vst [vmem:[%s2952_s11 + $0x48] sm:$0xff] %v1367_v18  ;;  %v1320_v48 = vadd.f32 %v2925_v63, %v1223_v1  ;;  %v1226_v7 = vadd.f32 %v1831_v4, %v2938_v34 }
 0x2aa   : > { %v1352_v60 = vadd.f32 %v2050_v46, %v1320_v48  ;;  %v1323_v8 = vadd.f32 %v2929_v3, %v1226_v7  ;;  %v1832_v26 = vpop.f32.mrb[40].mxu1 }
 0x2ab   : > { %v1833_v27 = vpop.f32.mrb[41].mxu1 }
 0x2ac   : > { %v1368_v20 = vmax.f32 %v1352_v60, 0.0  ;;  %v1353_v23 = vadd.f32 %v1323_v8, %v2549_v12  ;;  %v1834_v33 = vadd.f32 %v1833_v27, %v1832_v26  ;;  %v1835_v32 = vpop.f32.mrb[42].mxu1 }
 0x2ad   : > { %v1836_v38 = vpop.f32.mrb[43].mxu1 }
 0x2ae   : > { %1384 = vst [vmem:[%s2952_s11 + $0x50] sm:$0xff] %v1368_v20  ;;  %v1369_v41 = vmax.f32 %v1353_v23, 0.0  ;;  %v1231_v63 = vadd.f32 %v1834_v33, %v2938_v34  ;;  %v1837_v52 = vadd.f32 %v1836_v38, %v1835_v32 }
 0x2b0   : > { %1385 = vst [vmem:[%s2952_s11 + $0x58] sm:$0xff] %v1369_v41  ;;  %v1328_v17 = vadd.f32 %v2940_v42, %v1231_v63  ;;  %v1234_v3 = vadd.f32 %v1837_v52, %v2938_v34 }
 0x2b2   : > { %v1354_v47 = vadd.f32 %v2051_v35, %v1328_v17  ;;  %v1331_v12 = vadd.f32 %v2944_v19, %v1234_v3  ;;  %v1838_v62 = vpop.f32.mrb[44].mxu1 }
 0x2b3   : > { %v1839_v0 = vpop.f32.mrb[45].mxu1 }
 0x2b4   : > { %v1370_v10 = vmax.f32 %v1354_v47, 0.0  ;;  %v1355_v22 = vadd.f32 %v1331_v12, %v2575_v29  ;;  %v1840_v57 = vadd.f32 %v1839_v0, %v1838_v62  ;;  %v1841_v39 = vpop.f32.mrb[46].mxu1 }
 0x2b5   : > { %v1842_v40 = vpop.f32.mrb[47].mxu1 }
 0x2b6   : > { %1386 = vst [vmem:[%s2952_s11 + $0x60] sm:$0xff] %v1370_v10  ;;  %v1371_v42 = vmax.f32 %v1355_v22, 0.0  ;;  %v1239_v44 = vadd.f32 %v1840_v57, %v2938_v34  ;;  %v1843_v55 = vadd.f32 %v1842_v40, %v1841_v39 }
 0x2b8   : > { %1387 = vst [vmem:[%s2952_s11 + $0x68] sm:$0xff] %v1371_v42  ;;  %v1336_v19 = vadd.f32 %v2933_v30, %v1239_v44  ;;  %v1242_v59 = vadd.f32 %v1843_v55, %v2938_v34 }
 0x2ba   : > { %v1356_v29 = vadd.f32 %v2052_v11, %v1336_v19  ;;  %v1339_v50 = vadd.f32 %v2942_v5, %v1242_v59 }
 0x2bc   : > { %v1372_v21 = vmax.f32 %v1356_v29, 0.0  ;;  %v1357_v14 = vadd.f32 %v2053_v36, %v1339_v50 }
 0x2be   : > { %1388 = vst [vmem:[%s2952_s11 + $0x70] sm:$0xff] %v1372_v21  ;;  %v1373_v30 = vmax.f32 %v1357_v14, 0.0 }
 0x2c0   : > { %1389 = vst [vmem:[%s2952_s11 + $0x78] sm:$0xff] %v1373_v30 }
 0x2c1   : > { %2153 = shalt.err (!%p2150_p2)
}
 0x2c2   : > { %s2154_s6 = scalar_lea.hbm %s3011_s9, 2048  ;;  %s2158_s8 = scalar_lea.hbm %s3064_s5, 4096 }
 0x2c3   : > { %p2155_p13 = scmp.ne.s32.totalorder %s3011_s9, %s2154_s6  ;;  %p2159_p4 = scmp.lt.u32.totalorder %s3011_s9, %s3064_s5 }
 0x2c4   : > { %p2160_p5 = scmp.lt.u32.totalorder %s2158_s8, %s2154_s6  ;;  %p2162_p11 = scmp.lt.u32.totalorder %s2154_s6, %s3011_s9 }
 0x2c5   : > { %p2156_p6 = pnand %p2155_p13, %p3086_p0 }
 0x2c6   : > { %p2161_p8 = por %p2160_p5, %p2159_p4 }
 0x2c7   : > { %p2157_p10 = pneg %p2156_p6 }
 0x2c8   : > { %p2163_p1 = por %p2162_p11, %p2161_p8 }
 0x2ca   : > { %p2164_p3 = pnand %p2163_p1, %p2157_p10 }
 0x2cc   : > { %2167 = shalt.err (!%p2164_p3)
}
 0x2cd   : > { %s2221_s28 = smov 128   ;;  %s2222_s15 = smov 8  }
 0x2ce   : > { %1934 = dma.vmem_to_hbm [thread:$0]  (%p3086_p0), %s3013_s30, 2048, %s3011_s9, %s1391_s12, %s2221_s28, %s2221_s28, %s2222_s15  }
 0x2cf PF: > { %s1420_s16 = sand.u32 1, %s2198_s18   ;;  %p3087_p7 = scmp.ne.s32.totalorder %s3069_s25, 0 }
 0x2d0   : > { %p3088_p9 = scmp.ge.s32.totalorder %s2210_s21, 2  ;;  %s1421_s13 = scalar_lea.sflag [#allocation4], %s1420_s16 }
 0x2d2   : > { %p1948_p12 = pnand %p3088_p9, %p3087_p7 }
 0x2d4   : > { %2193 = dma.done.wait (!%p1948_p12), %s1421_s13, 2048  }
 0x2d5   : > { %2195 = vsyncadd (!%p1948_p12), %s1421_s13, 4294965248  ;;  %p19_p2 = scmp.ge.s32.totalorder %s2363_s14, 4   ;;  %s3089_s18 = smov %s2202_s19 }
 0x2d6   : > { %s3090_s19 = smov %s2206_s20  ;;  %s3091_s20 = smov %s2379_s27 }
 0x2d7   : > { %s3092_s21 = smov %s2363_s14  ;;  %21 = sbr.rel (!%p19_p2) target bundleno = 6 (0x6), region = 93 }
 0x2de   :  { %1426 = vsyncpa [#allocation3], 1 }
 0x2df   :  { %1428 = vsyncpa [#allocation3 + $0x1], 1 }
 0x2e0   :  { %1429 = vsyncpa [#allocation6], 1 }
 0x2e1   :  { %1430 = vsyncpa [#allocation4], 1 }
 0x2e2   :  { %1432 = vsyncpa [#allocation4 + $0x1], 1 }

</bundles_post_ra>
